<compile_context>
chip_gen: v5e
topology: v5e:2x2
jax: 0.10.0
libtpu: 0.0.40
codegen_flags: <defaults>
</compile_context>

<pallas_src>
import jax
import jax.numpy as jnp
from jax.experimental import pallas as pl
from jax.experimental.pallas import tpu as pltpu


def _gather_pool_kernel(idx_ref, w_ref, table_ref, out_ref, tbl_f32_ref, rows_ref):
    """One feature per grid step.

    idx_ref:     [F, B, L] int32   SMEM (scalar prefetch) padded jagged ids
    w_ref:       [B, L]    float32 per-id weights (0.0 on padded positions)
    table_ref:   [V, D]    bf16    this feature's embedding table (VMEM block)
    out_ref:     [B, D]    float32 slab at lane offset f*D of [B, sum(dims)]
    tbl_f32_ref: [V, D]    float32 scratch: table upcast (once per feature)
    rows_ref:    [B*L, D]  float32 scratch: gathered rows
    """
    f = pl.program_id(0)
    B, L = w_ref.shape
    V = table_ref.shape[0]
    D = out_ref.shape[-1]

    # Upcast the bf16 table block once; all dynamic row reads below then hit a
    # plain (8,128)-tiled f32 layout.
    tbl_f32_ref[...] = table_ref[...].astype(jnp.float32)

    # Gather the L rows of every sample.  Ids are SMEM scalars; each load is a
    # dynamic single-sublane slice of the VMEM table.  Ids are clamped for
    # memory safety -- padded positions carry weight 0, so they contribute 0.
    for b in range(B):                 # static unroll: B and L are small here
        for l in range(L):
            i = jnp.clip(idx_ref[f, b, l], 0, V - 1)
            rows_ref[pl.ds(b * L + l, 1), :] = tbl_f32_ref[pl.ds(i, 1), :]

    # Weighted sum pooling over the jagged length (vectorized, f32 accumulate).
    rows = rows_ref[...].reshape(B, L, D)
    out_ref[...] = jnp.sum(rows * w_ref[...][..., None], axis=1)


@jax.jit
def pooled_embedding_bag(idx, weights, tables):
    """Pooled EmbeddingBagCollection forward.

    idx:     [F, B, L] int32   padded jagged ids per feature
    weights: [F, B, L] float32 per-id weights (1.0 valid / 0.0 pad for an
                               unweighted EBC; real weights for a weighted one)
    tables:  [F, V, D] bf16/f32 embedding tables
    returns: [B, F*D]  float32 KeyedTensor values; feature f owns lanes
                               [f*D, (f+1)*D)  (lane-dense, no transpose).
    """
    F, B, L = idx.shape
    Ft, V, D = tables.shape
    assert Ft == F
    assert D % 128 == 0, "embedding dim must be lane-aligned (multiple of 128)"

    return pl.pallas_call(
        _gather_pool_kernel,
        out_shape=jax.ShapeDtypeStruct((B, F * D), jnp.float32),
        grid_spec=pltpu.PrefetchScalarGridSpec(
            num_scalar_prefetch=1,                    # ids -> SMEM
            grid=(F,),                                # one feature per step
            in_specs=[
                pl.BlockSpec((None, B, L), lambda f, idx_p: (f, 0, 0)),  # weights
                pl.BlockSpec((None, V, D), lambda f, idx_p: (f, 0, 0)),  # table
            ],
            out_specs=pl.BlockSpec((B, D), lambda f, idx_p: (0, f)),
            scratch_shapes=[
                pltpu.VMEM((V, D), jnp.float32),       # upcast table
                pltpu.VMEM((B * L, D), jnp.float32),   # gathered rows
            ],
        ),
        compiler_params=pltpu.CompilerParams(
            dimension_semantics=("parallel",)),
    )(idx.astype(jnp.int32), weights, tables)


def _post_sparsenn_forward_values(ebc_values, w_ebc_values, batch_size):
    """fp_ebc=None branch of _post_sparsenn_forward (values only)."""
    if w_ebc_values is not None:
        values = jnp.concatenate([ebc_values, w_ebc_values], axis=1)
    else:
        values = ebc_values
    b = values.shape[0]
    if batch_size is not None and batch_size != b:
        # Zero-pad rows up to batch_size with a single fused pad.
        values = jax.lax.pad(values, jnp.zeros((), values.dtype),
                             ((0, batch_size - b, 0), (0, 0, 0)))
    return values


class TestSparseArchPallas:
    """Mirror of torchrec TestSparseArch (fp_ebc=None): EmbeddingBagCollection
    (+ optional weighted EmbeddingBagCollection) + _post_sparsenn_forward."""

    def __init__(self, num_features, num_embeddings, embedding_dim,
                 num_weighted_features=0, num_weighted_embeddings=0,
                 weighted_embedding_dim=0, key=None, table_dtype=jnp.bfloat16):
        k0, k1 = jax.random.split(key)
        self.keys = [f"feature_{i}" for i in range(num_features)]
        self.weighted_keys = [
            f"weighted_feature_{i}" for i in range(num_weighted_features)]
        self.ebc_length_per_key = [embedding_dim] * num_features
        self.w_length_per_key = [weighted_embedding_dim] * num_weighted_features

        # bf16 table storage: halves table HBM->VMEM DMA; pooling is f32.
        self.tables = jax.random.normal(
            k0, (num_features, num_embeddings, embedding_dim),
            jnp.float32).astype(table_dtype)
        self.weighted_tables = None
        if num_weighted_features > 0:
            self.weighted_tables = jax.random.normal(
                k1, (num_weighted_features, num_weighted_embeddings,
                     weighted_embedding_dim), jnp.float32).astype(table_dtype)

        # Pre-stack unweighted + weighted tables once (vocab padded to a
        # common size) so forward is a single fused pallas_call whenever all
        # embedding dims match (dims differing falls back to two calls).
        self.fused_tables = None
        if (self.weighted_tables is not None
                and weighted_embedding_dim == embedding_dim):
            v_max = max(num_embeddings, num_weighted_embeddings)

            def pad_v(t):
                return jnp.pad(t, ((0, 0), (0, v_max - t.shape[1]), (0, 0)))

            self.fused_tables = jnp.concatenate(
                [pad_v(self.tables), pad_v(self.weighted_tables)], axis=0)

    def __call__(self, features, weighted_features=None, batch_size=None):
        idx, weights = features                        # densified KJT
        if (self.fused_tables is not None and weighted_features is not None):
            # Fused path: one pallas_call covers both EBCs and the concat.
            widx, wweights = weighted_features
            l_max = max(idx.shape[-1], widx.shape[-1])

            def pad_l(a):
                return jnp.pad(a, ((0, 0), (0, 0), (0, l_max - a.shape[-1])))

            idx_all = jnp.concatenate([pad_l(idx), pad_l(widx)], axis=0)
            w_all = jnp.concatenate([pad_l(weights), pad_l(wweights)], axis=0)
            values = pooled_embedding_bag(idx_all, w_all, self.fused_tables)
            values = _post_sparsenn_forward_values(values, None, batch_size)
            return {"keys": self.keys + self.weighted_keys,
                    "length_per_key": self.ebc_length_per_key + self.w_length_per_key,
                    "values": values}

        # Un-fused fallback (no weighted features, or mismatched dims).
        ebc_values = pooled_embedding_bag(idx, weights, self.tables)
        w_ebc_values = None
        if self.weighted_tables is not None and weighted_features is not None:
            widx, wweights = weighted_features
            w_ebc_values = pooled_embedding_bag(widx, wweights, self.weighted_tables)
        values = _post_sparsenn_forward_values(ebc_values, w_ebc_values, batch_size)
        if w_ebc_values is not None:
            keys = self.keys + self.weighted_keys
            lpk = self.ebc_length_per_key + self.w_length_per_key
        else:
            keys = self.keys
            lpk = self.ebc_length_per_key
        return {"keys": keys, "length_per_key": lpk, "values": values}


def _reference_pooled(idx, weights, tables):
    """Plain-JAX reference: gather + weighted sum pooling per feature."""
    F = idx.shape[0]
    outs = []
    for f in range(F):
        emb = jnp.take(tables[f].astype(jnp.float32), idx[f], axis=0)  # [B,L,D]
        outs.append(jnp.sum(emb * weights[f][..., None], axis=1))      # [B,D]
    return jnp.concatenate(outs, axis=1)                               # [B,sum]


if __name__ == "__main__":
    # EmbeddingBagCollection: 2 unweighted tables; weighted EBC: 1 table.
    F, V, D = 2, 256, 128        # features / vocab / embedding dim (lane-aligned)
    FW, VW, DW = 1, 128, 128     # weighted feature
    B, L, LW = 8, 8, 4           # batch, max jagged lengths

    root = jax.random.PRNGKey(0)
    k_model, k_len, k_idx, k_wlen, k_widx, k_w = jax.random.split(root, 6)

    model = TestSparseArchPallas(
        num_features=F, num_embeddings=V, embedding_dim=D,
        num_weighted_features=FW, num_weighted_embeddings=VW,
        weighted_embedding_dim=DW, key=k_model)

    # Synthetic KeyedJaggedTensor, densified to [F, B, L] ids plus per-id
    # weights (validity mask -> 1.0 for the unweighted EBC, float weights for
    # the weighted EBC, both 0.0 on padding).
    lengths = jax.random.randint(k_len, (F, B), 0, L + 1)
    idx = jax.random.randint(k_idx, (F, B, L), 0, V).astype(jnp.int32)
    mask = (jnp.arange(L)[None, None, :] < lengths[..., None]).astype(jnp.float32)

    wlengths = jax.random.randint(k_wlen, (FW, B), 0, LW + 1)
    widx = jax.random.randint(k_widx, (FW, B, LW), 0, VW).astype(jnp.int32)
    wmask = (jnp.arange(LW)[None, None, :] < wlengths[..., None]).astype(jnp.float32)
    wweights = jax.random.uniform(k_w, (FW, B, LW), jnp.float32) * wmask

    out = model(features=(idx, mask), weighted_features=(widx, wweights),
                batch_size=None)
    values = jax.block_until_ready(out["values"])

    ref = jnp.concatenate(
        [_reference_pooled(idx, mask, model.tables),
         _reference_pooled(widx, wweights, model.weighted_tables)], axis=1)
    assert values.shape == (B, F * D + FW * DW), values.shape
    assert jnp.allclose(values, ref, atol=1e-4, rtol=1e-4), "mismatch vs reference"

    # Exercise the batch_size zero-pad branch of _post_sparsenn_forward too.
    out_p = model(features=(idx, mask), weighted_features=(widx, wweights),
                  batch_size=B + 3)
    vp = jax.block_until_ready(out_p["values"])
    assert vp.shape == (B + 3, F * D + FW * DW)
    assert jnp.allclose(vp[:B], ref, atol=1e-4, rtol=1e-4)
    assert jnp.all(vp[B:] == 0.0)

    print("KERNEL_OK")
</pallas_src>

<mosaic_0001>
module attributes {stable_mosaic.version = 11 : i64} {
  func.func @_gather_pool_kernel(%arg0: i32, %arg1: memref<3x8x8xi32, #tpu.memory_space<smem>>, %arg2: memref<1x8x8xf32, #tpu.memory_space<vmem>>, %arg3: memref<1x256x128xbf16, #tpu.memory_space<vmem>>, %arg4: memref<8x128xf32, #tpu.memory_space<vmem>>, %arg5: memref<256x128xf32, #tpu.memory_space<vmem>>, %arg6: memref<64x128xf32, #tpu.memory_space<vmem>>) attributes {dimension_semantics = [#tpu.dimension_semantics<parallel>], iteration_bounds = array<i64: 3>, scalar_prefetch = 1 : i64, scratch_operands = 2 : i64, tpu.core_type = #tpu.core_type<tc>, window_params = [{transform_indices = @transform_0, window_bounds = array<i64: 1, 8, 8>}, {transform_indices = @transform_1, window_bounds = array<i64: 1, 256, 128>}, {transform_indices = @transform_2, window_bounds = array<i64: 8, 128>}]} {
    %c0 = arith.constant 0 : index
    %c0_0 = arith.constant 0 : index
    %c0_1 = arith.constant 0 : index
    %0 = vector.load %arg3[%c0, %c0_0, %c0_1] : memref<1x256x128xbf16, #tpu.memory_space<vmem>>, vector<1x256x128xbf16>
    %1 = vector.shape_cast %0 : vector<1x256x128xbf16> to vector<256x128xbf16>
    %2 = arith.extf %1 : vector<256x128xbf16> to vector<256x128xf32>
    %c0_2 = arith.constant 0 : index
    %c0_3 = arith.constant 0 : index
    %3 = vector.load %arg5[%c0_2, %c0_3] : memref<256x128xf32, #tpu.memory_space<vmem>>, vector<256x128xf32>
    tpu.vector_store %arg5[%c0_2, %c0_3], %2 {strides = array<i32>} : memref<256x128xf32, #tpu.memory_space<vmem>>, vector<256x128xf32>,
    %4 = arith.index_cast %arg0 : i32 to index
    %c0_4 = arith.constant 0 : index
    %c0_5 = arith.constant 0 : index
    %5 = memref.load %arg1[%4, %c0_4, %c0_5] : memref<3x8x8xi32, #tpu.memory_space<smem>>
    %c0_i32 = arith.constant 0 : i32
    %c255_i32 = arith.constant 255 : i32
    %6 = arith.maxsi %c0_i32, %5 : i32
    %7 = arith.minsi %c255_i32, %6 : i32
    %8 = arith.index_cast %7 : i32 to index
    %c0_6 = arith.constant 0 : index
    %9 = vector.load %arg5[%8, %c0_6] : memref<256x128xf32, #tpu.memory_space<vmem>>, vector<1x128xf32>
    %c0_7 = arith.constant 0 : index
    %c0_8 = arith.constant 0 : index
    %10 = vector.load %arg6[%c0_7, %c0_8] : memref<64x128xf32, #tpu.memory_space<vmem>>, vector<1x128xf32>
    tpu.vector_store %arg6[%c0_7, %c0_8], %9 {strides = array<i32>} : memref<64x128xf32, #tpu.memory_space<vmem>>, vector<1x128xf32>,
    %11 = arith.index_cast %arg0 : i32 to index
    %c0_9 = arith.constant 0 : index
    %c1 = arith.constant 1 : index
    %12 = memref.load %arg1[%11, %c0_9, %c1] : memref<3x8x8xi32, #tpu.memory_space<smem>>
    %c0_i32_10 = arith.constant 0 : i32
    %c255_i32_11 = arith.constant 255 : i32
    %13 = arith.maxsi %c0_i32_10, %12 : i32
    %14 = arith.minsi %c255_i32_11, %13 : i32
    %15 = arith.index_cast %14 : i32 to index
    %c0_12 = arith.constant 0 : index
    %16 = vector.load %arg5[%15, %c0_12] : memref<256x128xf32, #tpu.memory_space<vmem>>, vector<1x128xf32>
    %c1_13 = arith.constant 1 : index
    %c0_14 = arith.constant 0 : index
    %17 = vector.load %arg6[%c1_13, %c0_14] : memref<64x128xf32, #tpu.memory_space<vmem>>, vector<1x128xf32>
    tpu.vector_store %arg6[%c1_13, %c0_14], %16 {strides = array<i32>} : memref<64x128xf32, #tpu.memory_space<vmem>>, vector<1x128xf32>,
    %18 = arith.index_cast %arg0 : i32 to index
    %c0_15 = arith.constant 0 : index
    %c2 = arith.constant 2 : index
    %19 = memref.load %arg1[%18, %c0_15, %c2] : memref<3x8x8xi32, #tpu.memory_space<smem>>
    %c0_i32_16 = arith.constant 0 : i32
    %c255_i32_17 = arith.constant 255 : i32
    %20 = arith.maxsi %c0_i32_16, %19 : i32
    %21 = arith.minsi %c255_i32_17, %20 : i32
    %22 = arith.index_cast %21 : i32 to index
    %c0_18 = arith.constant 0 : index
    %23 = vector.load %arg5[%22, %c0_18] : memref<256x128xf32, #tpu.memory_space<vmem>>, vector<1x128xf32>
    %c2_19 = arith.constant 2 : index
    %c0_20 = arith.constant 0 : index
    %24 = vector.load %arg6[%c2_19, %c0_20] : memref<64x128xf32, #tpu.memory_space<vmem>>, vector<1x128xf32>
    tpu.vector_store %arg6[%c2_19, %c0_20], %23 {strides = array<i32>} : memref<64x128xf32, #tpu.memory_space<vmem>>, vector<1x128xf32>,
    %25 = arith.index_cast %arg0 : i32 to index
    %c0_21 = arith.constant 0 : index
    %c3 = arith.constant 3 : index
    %26 = memref.load %arg1[%25, %c0_21, %c3] : memref<3x8x8xi32, #tpu.memory_space<smem>>
    %c0_i32_22 = arith.constant 0 : i32
    %c255_i32_23 = arith.constant 255 : i32
    %27 = arith.maxsi %c0_i32_22, %26 : i32
    %28 = arith.minsi %c255_i32_23, %27 : i32
    %29 = arith.index_cast %28 : i32 to index
    %c0_24 = arith.constant 0 : index
    %30 = vector.load %arg5[%29, %c0_24] : memref<256x128xf32, #tpu.memory_space<vmem>>, vector<1x128xf32>
    %c3_25 = arith.constant 3 : index
    %c0_26 = arith.constant 0 : index
    %31 = vector.load %arg6[%c3_25, %c0_26] : memref<64x128xf32, #tpu.memory_space<vmem>>, vector<1x128xf32>
    tpu.vector_store %arg6[%c3_25, %c0_26], %30 {strides = array<i32>} : memref<64x128xf32, #tpu.memory_space<vmem>>, vector<1x128xf32>,
    %32 = arith.index_cast %arg0 : i32 to index
    %c0_27 = arith.constant 0 : index
    %c4 = arith.constant 4 : index
    %33 = memref.load %arg1[%32, %c0_27, %c4] : memref<3x8x8xi32, #tpu.memory_space<smem>>
    %c0_i32_28 = arith.constant 0 : i32
    %c255_i32_29 = arith.constant 255 : i32
    %34 = arith.maxsi %c0_i32_28, %33 : i32
    %35 = arith.minsi %c255_i32_29, %34 : i32
    %36 = arith.index_cast %35 : i32 to index
    %c0_30 = arith.constant 0 : index
    %37 = vector.load %arg5[%36, %c0_30] : memref<256x128xf32, #tpu.memory_space<vmem>>, vector<1x128xf32>
    %c4_31 = arith.constant 4 : index
    %c0_32 = arith.constant 0 : index
    %38 = vector.load %arg6[%c4_31, %c0_32] : memref<64x128xf32, #tpu.memory_space<vmem>>, vector<1x128xf32>
    tpu.vector_store %arg6[%c4_31, %c0_32], %37 {strides = array<i32>} : memref<64x128xf32, #tpu.memory_space<vmem>>, vector<1x128xf32>,
    %39 = arith.index_cast %arg0 : i32 to index
    %c0_33 = arith.constant 0 : index
    %c5 = arith.constant 5 : index
    %40 = memref.load %arg1[%39, %c0_33, %c5] : memref<3x8x8xi32, #tpu.memory_space<smem>>
    %c0_i32_34 = arith.constant 0 : i32
    %c255_i32_35 = arith.constant 255 : i32
    %41 = arith.maxsi %c0_i32_34, %40 : i32
    %42 = arith.minsi %c255_i32_35, %41 : i32
    %43 = arith.index_cast %42 : i32 to index
    %c0_36 = arith.constant 0 : index
    %44 = vector.load %arg5[%43, %c0_36] : memref<256x128xf32, #tpu.memory_space<vmem>>, vector<1x128xf32>
    %c5_37 = arith.constant 5 : index
    %c0_38 = arith.constant 0 : index
    %45 = vector.load %arg6[%c5_37, %c0_38] : memref<64x128xf32, #tpu.memory_space<vmem>>, vector<1x128xf32>
    tpu.vector_store %arg6[%c5_37, %c0_38], %44 {strides = array<i32>} : memref<64x128xf32, #tpu.memory_space<vmem>>, vector<1x128xf32>,
    %46 = arith.index_cast %arg0 : i32 to index
    %c0_39 = arith.constant 0 : index
    %c6 = arith.constant 6 : index
    %47 = memref.load %arg1[%46, %c0_39, %c6] : memref<3x8x8xi32, #tpu.memory_space<smem>>
    %c0_i32_40 = arith.constant 0 : i32
    %c255_i32_41 = arith.constant 255 : i32
    %48 = arith.maxsi %c0_i32_40, %47 : i32
    %49 = arith.minsi %c255_i32_41, %48 : i32
    %50 = arith.index_cast %49 : i32 to index
    %c0_42 = arith.constant 0 : index
    %51 = vector.load %arg5[%50, %c0_42] : memref<256x128xf32, #tpu.memory_space<vmem>>, vector<1x128xf32>
    %c6_43 = arith.constant 6 : index
    %c0_44 = arith.constant 0 : index
    %52 = vector.load %arg6[%c6_43, %c0_44] : memref<64x128xf32, #tpu.memory_space<vmem>>, vector<1x128xf32>
    tpu.vector_store %arg6[%c6_43, %c0_44], %51 {strides = array<i32>} : memref<64x128xf32, #tpu.memory_space<vmem>>, vector<1x128xf32>,
    %53 = arith.index_cast %arg0 : i32 to index
    %c0_45 = arith.constant 0 : index
    %c7 = arith.constant 7 : index
    %54 = memref.load %arg1[%53, %c0_45, %c7] : memref<3x8x8xi32, #tpu.memory_space<smem>>
    %c0_i32_46 = arith.constant 0 : i32
    %c255_i32_47 = arith.constant 255 : i32
    %55 = arith.maxsi %c0_i32_46, %54 : i32
    %56 = arith.minsi %c255_i32_47, %55 : i32
    %57 = arith.index_cast %56 : i32 to index
    %c0_48 = arith.constant 0 : index
    %58 = vector.load %arg5[%57, %c0_48] : memref<256x128xf32, #tpu.memory_space<vmem>>, vector<1x128xf32>
    %c7_49 = arith.constant 7 : index
    %c0_50 = arith.constant 0 : index
    %59 = vector.load %arg6[%c7_49, %c0_50] : memref<64x128xf32, #tpu.memory_space<vmem>>, vector<1x128xf32>
    tpu.vector_store %arg6[%c7_49, %c0_50], %58 {strides = array<i32>} : memref<64x128xf32, #tpu.memory_space<vmem>>, vector<1x128xf32>,
    %60 = arith.index_cast %arg0 : i32 to index
    %c1_51 = arith.constant 1 : index
    %c0_52 = arith.constant 0 : index
    %61 = memref.load %arg1[%60, %c1_51, %c0_52] : memref<3x8x8xi32, #tpu.memory_space<smem>>
    %c0_i32_53 = arith.constant 0 : i32
    %c255_i32_54 = arith.constant 255 : i32
    %62 = arith.maxsi %c0_i32_53, %61 : i32
    %63 = arith.minsi %c255_i32_54, %62 : i32
    %64 = arith.index_cast %63 : i32 to index
    %c0_55 = arith.constant 0 : index
    %65 = vector.load %arg5[%64, %c0_55] : memref<256x128xf32, #tpu.memory_space<vmem>>, vector<1x128xf32>
    %c8 = arith.constant 8 : index
    %c0_56 = arith.constant 0 : index
    %66 = vector.load %arg6[%c8, %c0_56] : memref<64x128xf32, #tpu.memory_space<vmem>>, vector<1x128xf32>
    tpu.vector_store %arg6[%c8, %c0_56], %65 {strides = array<i32>} : memref<64x128xf32, #tpu.memory_space<vmem>>, vector<1x128xf32>,
    %67 = arith.index_cast %arg0 : i32 to index
    %c1_57 = arith.constant 1 : index
    %c1_58 = arith.constant 1 : index
    %68 = memref.load %arg1[%67, %c1_57, %c1_58] : memref<3x8x8xi32, #tpu.memory_space<smem>>
    %c0_i32_59 = arith.constant 0 : i32
    %c255_i32_60 = arith.constant 255 : i32
    %69 = arith.maxsi %c0_i32_59, %68 : i32
    %70 = arith.minsi %c255_i32_60, %69 : i32
    %71 = arith.index_cast %70 : i32 to index
    %c0_61 = arith.constant 0 : index
    %72 = vector.load %arg5[%71, %c0_61] : memref<256x128xf32, #tpu.memory_space<vmem>>, vector<1x128xf32>
    %c9 = arith.constant 9 : index
    %c0_62 = arith.constant 0 : index
    %73 = vector.load %arg6[%c9, %c0_62] : memref<64x128xf32, #tpu.memory_space<vmem>>, vector<1x128xf32>
    tpu.vector_store %arg6[%c9, %c0_62], %72 {strides = array<i32>} : memref<64x128xf32, #tpu.memory_space<vmem>>, vector<1x128xf32>,
    %74 = arith.index_cast %arg0 : i32 to index
    %c1_63 = arith.constant 1 : index
    %c2_64 = arith.constant 2 : index
    %75 = memref.load %arg1[%74, %c1_63, %c2_64] : memref<3x8x8xi32, #tpu.memory_space<smem>>
    %c0_i32_65 = arith.constant 0 : i32
    %c255_i32_66 = arith.constant 255 : i32
    %76 = arith.maxsi %c0_i32_65, %75 : i32
    %77 = arith.minsi %c255_i32_66, %76 : i32
    %78 = arith.index_cast %77 : i32 to index
    %c0_67 = arith.constant 0 : index
    %79 = vector.load %arg5[%78, %c0_67] : memref<256x128xf32, #tpu.memory_space<vmem>>, vector<1x128xf32>
    %c10 = arith.constant 10 : index
    %c0_68 = arith.constant 0 : index
    %80 = vector.load %arg6[%c10, %c0_68] : memref<64x128xf32, #tpu.memory_space<vmem>>, vector<1x128xf32>
    tpu.vector_store %arg6[%c10, %c0_68], %79 {strides = array<i32>} : memref<64x128xf32, #tpu.memory_space<vmem>>, vector<1x128xf32>,
    %81 = arith.index_cast %arg0 : i32 to index
    %c1_69 = arith.constant 1 : index
    %c3_70 = arith.constant 3 : index
    %82 = memref.load %arg1[%81, %c1_69, %c3_70] : memref<3x8x8xi32, #tpu.memory_space<smem>>
    %c0_i32_71 = arith.constant 0 : i32
    %c255_i32_72 = arith.constant 255 : i32
    %83 = arith.maxsi %c0_i32_71, %82 : i32
    %84 = arith.minsi %c255_i32_72, %83 : i32
    %85 = arith.index_cast %84 : i32 to index
    %c0_73 = arith.constant 0 : index
    %86 = vector.load %arg5[%85, %c0_73] : memref<256x128xf32, #tpu.memory_space<vmem>>, vector<1x128xf32>
    %c11 = arith.constant 11 : index
    %c0_74 = arith.constant 0 : index
    %87 = vector.load %arg6[%c11, %c0_74] : memref<64x128xf32, #tpu.memory_space<vmem>>, vector<1x128xf32>
    tpu.vector_store %arg6[%c11, %c0_74], %86 {strides = array<i32>} : memref<64x128xf32, #tpu.memory_space<vmem>>, vector<1x128xf32>,
    %88 = arith.index_cast %arg0 : i32 to index
    %c1_75 = arith.constant 1 : index
    %c4_76 = arith.constant 4 : index
    %89 = memref.load %arg1[%88, %c1_75, %c4_76] : memref<3x8x8xi32, #tpu.memory_space<smem>>
    %c0_i32_77 = arith.constant 0 : i32
    %c255_i32_78 = arith.constant 255 : i32
    %90 = arith.maxsi %c0_i32_77, %89 : i32
    %91 = arith.minsi %c255_i32_78, %90 : i32
    %92 = arith.index_cast %91 : i32 to index
    %c0_79 = arith.constant 0 : index
    %93 = vector.load %arg5[%92, %c0_79] : memref<256x128xf32, #tpu.memory_space<vmem>>, vector<1x128xf32>
    %c12 = arith.constant 12 : index
    %c0_80 = arith.constant 0 : index
    %94 = vector.load %arg6[%c12, %c0_80] : memref<64x128xf32, #tpu.memory_space<vmem>>, vector<1x128xf32>
    tpu.vector_store %arg6[%c12, %c0_80], %93 {strides = array<i32>} : memref<64x128xf32, #tpu.memory_space<vmem>>, vector<1x128xf32>,
    %95 = arith.index_cast %arg0 : i32 to index
    %c1_81 = arith.constant 1 : index
    %c5_82 = arith.constant 5 : index
    %96 = memref.load %arg1[%95, %c1_81, %c5_82] : memref<3x8x8xi32, #tpu.memory_space<smem>>
    %c0_i32_83 = arith.constant 0 : i32
    %c255_i32_84 = arith.constant 255 : i32
    %97 = arith.maxsi %c0_i32_83, %96 : i32
    %98 = arith.minsi %c255_i32_84, %97 : i32
    %99 = arith.index_cast %98 : i32 to index
    %c0_85 = arith.constant 0 : index
    %100 = vector.load %arg5[%99, %c0_85] : memref<256x128xf32, #tpu.memory_space<vmem>>, vector<1x128xf32>
    %c13 = arith.constant 13 : index
    %c0_86 = arith.constant 0 : index
    %101 = vector.load %arg6[%c13, %c0_86] : memref<64x128xf32, #tpu.memory_space<vmem>>, vector<1x128xf32>
    tpu.vector_store %arg6[%c13, %c0_86], %100 {strides = array<i32>} : memref<64x128xf32, #tpu.memory_space<vmem>>, vector<1x128xf32>,
    %102 = arith.index_cast %arg0 : i32 to index
    %c1_87 = arith.constant 1 : index
    %c6_88 = arith.constant 6 : index
    %103 = memref.load %arg1[%102, %c1_87, %c6_88] : memref<3x8x8xi32, #tpu.memory_space<smem>>
    %c0_i32_89 = arith.constant 0 : i32
    %c255_i32_90 = arith.constant 255 : i32
    %104 = arith.maxsi %c0_i32_89, %103 : i32
    %105 = arith.minsi %c255_i32_90, %104 : i32
    %106 = arith.index_cast %105 : i32 to index
    %c0_91 = arith.constant 0 : index
    %107 = vector.load %arg5[%106, %c0_91] : memref<256x128xf32, #tpu.memory_space<vmem>>, vector<1x128xf32>
    %c14 = arith.constant 14 : index
    %c0_92 = arith.constant 0 : index
    %108 = vector.load %arg6[%c14, %c0_92] : memref<64x128xf32, #tpu.memory_space<vmem>>, vector<1x128xf32>
    tpu.vector_store %arg6[%c14, %c0_92], %107 {strides = array<i32>} : memref<64x128xf32, #tpu.memory_space<vmem>>, vector<1x128xf32>,
    %109 = arith.index_cast %arg0 : i32 to index
    %c1_93 = arith.constant 1 : index
    %c7_94 = arith.constant 7 : index
    %110 = memref.load %arg1[%109, %c1_93, %c7_94] : memref<3x8x8xi32, #tpu.memory_space<smem>>
    %c0_i32_95 = arith.constant 0 : i32
    %c255_i32_96 = arith.constant 255 : i32
    %111 = arith.maxsi %c0_i32_95, %110 : i32
    %112 = arith.minsi %c255_i32_96, %111 : i32
    %113 = arith.index_cast %112 : i32 to index
    %c0_97 = arith.constant 0 : index
    %114 = vector.load %arg5[%113, %c0_97] : memref<256x128xf32, #tpu.memory_space<vmem>>, vector<1x128xf32>
    %c15 = arith.constant 15 : index
    %c0_98 = arith.constant 0 : index
    %115 = vector.load %arg6[%c15, %c0_98] : memref<64x128xf32, #tpu.memory_space<vmem>>, vector<1x128xf32>
    tpu.vector_store %arg6[%c15, %c0_98], %114 {strides = array<i32>} : memref<64x128xf32, #tpu.memory_space<vmem>>, vector<1x128xf32>,
    %116 = arith.index_cast %arg0 : i32 to index
    %c2_99 = arith.constant 2 : index
    %c0_100 = arith.constant 0 : index
    %117 = memref.load %arg1[%116, %c2_99, %c0_100] : memref<3x8x8xi32, #tpu.memory_space<smem>>
    %c0_i32_101 = arith.constant 0 : i32
    %c255_i32_102 = arith.constant 255 : i32
    %118 = arith.maxsi %c0_i32_101, %117 : i32
    %119 = arith.minsi %c255_i32_102, %118 : i32
    %120 = arith.index_cast %119 : i32 to index
    %c0_103 = arith.constant 0 : index
    %121 = vector.load %arg5[%120, %c0_103] : memref<256x128xf32, #tpu.memory_space<vmem>>, vector<1x128xf32>
    %c16 = arith.constant 16 : index
    %c0_104 = arith.constant 0 : index
    %122 = vector.load %arg6[%c16, %c0_104] : memref<64x128xf32, #tpu.memory_space<vmem>>, vector<1x128xf32>
    tpu.vector_store %arg6[%c16, %c0_104], %121 {strides = array<i32>} : memref<64x128xf32, #tpu.memory_space<vmem>>, vector<1x128xf32>,
    %123 = arith.index_cast %arg0 : i32 to index
    %c2_105 = arith.constant 2 : index
    %c1_106 = arith.constant 1 : index
    %124 = memref.load %arg1[%123, %c2_105, %c1_106] : memref<3x8x8xi32, #tpu.memory_space<smem>>
    %c0_i32_107 = arith.constant 0 : i32
    %c255_i32_108 = arith.constant 255 : i32
    %125 = arith.maxsi %c0_i32_107, %124 : i32
    %126 = arith.minsi %c255_i32_108, %125 : i32
    %127 = arith.index_cast %126 : i32 to index
    %c0_109 = arith.constant 0 : index
    %128 = vector.load %arg5[%127, %c0_109] : memref<256x128xf32, #tpu.memory_space<vmem>>, vector<1x128xf32>
    %c17 = arith.constant 17 : index
    %c0_110 = arith.constant 0 : index
    %129 = vector.load %arg6[%c17, %c0_110] : memref<64x128xf32, #tpu.memory_space<vmem>>, vector<1x128xf32>
    tpu.vector_store %arg6[%c17, %c0_110], %128 {strides = array<i32>} : memref<64x128xf32, #tpu.memory_space<vmem>>, vector<1x128xf32>,
    %130 = arith.index_cast %arg0 : i32 to index
    %c2_111 = arith.constant 2 : index
    %c2_112 = arith.constant 2 : index
    %131 = memref.load %arg1[%130, %c2_111, %c2_112] : memref<3x8x8xi32, #tpu.memory_space<smem>>
    %c0_i32_113 = arith.constant 0 : i32
    %c255_i32_114 = arith.constant 255 : i32
    %132 = arith.maxsi %c0_i32_113, %131 : i32
    %133 = arith.minsi %c255_i32_114, %132 : i32
    %134 = arith.index_cast %133 : i32 to index
    %c0_115 = arith.constant 0 : index
    %135 = vector.load %arg5[%134, %c0_115] : memref<256x128xf32, #tpu.memory_space<vmem>>, vector<1x128xf32>
    %c18 = arith.constant 18 : index
    %c0_116 = arith.constant 0 : index
    %136 = vector.load %arg6[%c18, %c0_116] : memref<64x128xf32, #tpu.memory_space<vmem>>, vector<1x128xf32>
    tpu.vector_store %arg6[%c18, %c0_116], %135 {strides = array<i32>} : memref<64x128xf32, #tpu.memory_space<vmem>>, vector<1x128xf32>,
    %137 = arith.index_cast %arg0 : i32 to index
    %c2_117 = arith.constant 2 : index
    %c3_118 = arith.constant 3 : index
    %138 = memref.load %arg1[%137, %c2_117, %c3_118] : memref<3x8x8xi32, #tpu.memory_space<smem>>
    %c0_i32_119 = arith.constant 0 : i32
    %c255_i32_120 = arith.constant 255 : i32
    %139 = arith.maxsi %c0_i32_119, %138 : i32
    %140 = arith.minsi %c255_i32_120, %139 : i32
    %141 = arith.index_cast %140 : i32 to index
    %c0_121 = arith.constant 0 : index
    %142 = vector.load %arg5[%141, %c0_121] : memref<256x128xf32, #tpu.memory_space<vmem>>, vector<1x128xf32>
    %c19 = arith.constant 19 : index
    %c0_122 = arith.constant 0 : index
    %143 = vector.load %arg6[%c19, %c0_122] : memref<64x128xf32, #tpu.memory_space<vmem>>, vector<1x128xf32>
    tpu.vector_store %arg6[%c19, %c0_122], %142 {strides = array<i32>} : memref<64x128xf32, #tpu.memory_space<vmem>>, vector<1x128xf32>,
    %144 = arith.index_cast %arg0 : i32 to index
    %c2_123 = arith.constant 2 : index
    %c4_124 = arith.constant 4 : index
    %145 = memref.load %arg1[%144, %c2_123, %c4_124] : memref<3x8x8xi32, #tpu.memory_space<smem>>
    %c0_i32_125 = arith.constant 0 : i32
    %c255_i32_126 = arith.constant 255 : i32
    %146 = arith.maxsi %c0_i32_125, %145 : i32
    %147 = arith.minsi %c255_i32_126, %146 : i32
    %148 = arith.index_cast %147 : i32 to index
    %c0_127 = arith.constant 0 : index
    %149 = vector.load %arg5[%148, %c0_127] : memref<256x128xf32, #tpu.memory_space<vmem>>, vector<1x128xf32>
    %c20 = arith.constant 20 : index
    %c0_128 = arith.constant 0 : index
    %150 = vector.load %arg6[%c20, %c0_128] : memref<64x128xf32, #tpu.memory_space<vmem>>, vector<1x128xf32>
    tpu.vector_store %arg6[%c20, %c0_128], %149 {strides = array<i32>} : memref<64x128xf32, #tpu.memory_space<vmem>>, vector<1x128xf32>,
    %151 = arith.index_cast %arg0 : i32 to index
    %c2_129 = arith.constant 2 : index
    %c5_130 = arith.constant 5 : index
    %152 = memref.load %arg1[%151, %c2_129, %c5_130] : memref<3x8x8xi32, #tpu.memory_space<smem>>
    %c0_i32_131 = arith.constant 0 : i32
    %c255_i32_132 = arith.constant 255 : i32
    %153 = arith.maxsi %c0_i32_131, %152 : i32
    %154 = arith.minsi %c255_i32_132, %153 : i32
    %155 = arith.index_cast %154 : i32 to index
    %c0_133 = arith.constant 0 : index
    %156 = vector.load %arg5[%155, %c0_133] : memref<256x128xf32, #tpu.memory_space<vmem>>, vector<1x128xf32>
    %c21 = arith.constant 21 : index
    %c0_134 = arith.constant 0 : index
    %157 = vector.load %arg6[%c21, %c0_134] : memref<64x128xf32, #tpu.memory_space<vmem>>, vector<1x128xf32>
    tpu.vector_store %arg6[%c21, %c0_134], %156 {strides = array<i32>} : memref<64x128xf32, #tpu.memory_space<vmem>>, vector<1x128xf32>,
    %158 = arith.index_cast %arg0 : i32 to index
    %c2_135 = arith.constant 2 : index
    %c6_136 = arith.constant 6 : index
    %159 = memref.load %arg1[%158, %c2_135, %c6_136] : memref<3x8x8xi32, #tpu.memory_space<smem>>
    %c0_i32_137 = arith.constant 0 : i32
    %c255_i32_138 = arith.constant 255 : i32
    %160 = arith.maxsi %c0_i32_137, %159 : i32
    %161 = arith.minsi %c255_i32_138, %160 : i32
    %162 = arith.index_cast %161 : i32 to index
    %c0_139 = arith.constant 0 : index
    %163 = vector.load %arg5[%162, %c0_139] : memref<256x128xf32, #tpu.memory_space<vmem>>, vector<1x128xf32>
    %c22 = arith.constant 22 : index
    %c0_140 = arith.constant 0 : index
    %164 = vector.load %arg6[%c22, %c0_140] : memref<64x128xf32, #tpu.memory_space<vmem>>, vector<1x128xf32>
    tpu.vector_store %arg6[%c22, %c0_140], %163 {strides = array<i32>} : memref<64x128xf32, #tpu.memory_space<vmem>>, vector<1x128xf32>,
    %165 = arith.index_cast %arg0 : i32 to index
    %c2_141 = arith.constant 2 : index
    %c7_142 = arith.constant 7 : index
    %166 = memref.load %arg1[%165, %c2_141, %c7_142] : memref<3x8x8xi32, #tpu.memory_space<smem>>
    %c0_i32_143 = arith.constant 0 : i32
    %c255_i32_144 = arith.constant 255 : i32
    %167 = arith.maxsi %c0_i32_143, %166 : i32
    %168 = arith.minsi %c255_i32_144, %167 : i32
    %169 = arith.index_cast %168 : i32 to index
    %c0_145 = arith.constant 0 : index
    %170 = vector.load %arg5[%169, %c0_145] : memref<256x128xf32, #tpu.memory_space<vmem>>, vector<1x128xf32>
    %c23 = arith.constant 23 : index
    %c0_146 = arith.constant 0 : index
    %171 = vector.load %arg6[%c23, %c0_146] : memref<64x128xf32, #tpu.memory_space<vmem>>, vector<1x128xf32>
    tpu.vector_store %arg6[%c23, %c0_146], %170 {strides = array<i32>} : memref<64x128xf32, #tpu.memory_space<vmem>>, vector<1x128xf32>,
    %172 = arith.index_cast %arg0 : i32 to index
    %c3_147 = arith.constant 3 : index
    %c0_148 = arith.constant 0 : index
    %173 = memref.load %arg1[%172, %c3_147, %c0_148] : memref<3x8x8xi32, #tpu.memory_space<smem>>
    %c0_i32_149 = arith.constant 0 : i32
    %c255_i32_150 = arith.constant 255 : i32
    %174 = arith.maxsi %c0_i32_149, %173 : i32
    %175 = arith.minsi %c255_i32_150, %174 : i32
    %176 = arith.index_cast %175 : i32 to index
    %c0_151 = arith.constant 0 : index
    %177 = vector.load %arg5[%176, %c0_151] : memref<256x128xf32, #tpu.memory_space<vmem>>, vector<1x128xf32>
    %c24 = arith.constant 24 : index
    %c0_152 = arith.constant 0 : index
    %178 = vector.load %arg6[%c24, %c0_152] : memref<64x128xf32, #tpu.memory_space<vmem>>, vector<1x128xf32>
    tpu.vector_store %arg6[%c24, %c0_152], %177 {strides = array<i32>} : memref<64x128xf32, #tpu.memory_space<vmem>>, vector<1x128xf32>,
    %179 = arith.index_cast %arg0 : i32 to index
    %c3_153 = arith.constant 3 : index
    %c1_154 = arith.constant 1 : index
    %180 = memref.load %arg1[%179, %c3_153, %c1_154] : memref<3x8x8xi32, #tpu.memory_space<smem>>
    %c0_i32_155 = arith.constant 0 : i32
    %c255_i32_156 = arith.constant 255 : i32
    %181 = arith.maxsi %c0_i32_155, %180 : i32
    %182 = arith.minsi %c255_i32_156, %181 : i32
    %183 = arith.index_cast %182 : i32 to index
    %c0_157 = arith.constant 0 : index
    %184 = vector.load %arg5[%183, %c0_157] : memref<256x128xf32, #tpu.memory_space<vmem>>, vector<1x128xf32>
    %c25 = arith.constant 25 : index
    %c0_158 = arith.constant 0 : index
    %185 = vector.load %arg6[%c25, %c0_158] : memref<64x128xf32, #tpu.memory_space<vmem>>, vector<1x128xf32>
    tpu.vector_store %arg6[%c25, %c0_158], %184 {strides = array<i32>} : memref<64x128xf32, #tpu.memory_space<vmem>>, vector<1x128xf32>,
    %186 = arith.index_cast %arg0 : i32 to index
    %c3_159 = arith.constant 3 : index
    %c2_160 = arith.constant 2 : index
    %187 = memref.load %arg1[%186, %c3_159, %c2_160] : memref<3x8x8xi32, #tpu.memory_space<smem>>
    %c0_i32_161 = arith.constant 0 : i32
    %c255_i32_162 = arith.constant 255 : i32
    %188 = arith.maxsi %c0_i32_161, %187 : i32
    %189 = arith.minsi %c255_i32_162, %188 : i32
    %190 = arith.index_cast %189 : i32 to index
    %c0_163 = arith.constant 0 : index
    %191 = vector.load %arg5[%190, %c0_163] : memref<256x128xf32, #tpu.memory_space<vmem>>, vector<1x128xf32>
    %c26 = arith.constant 26 : index
    %c0_164 = arith.constant 0 : index
    %192 = vector.load %arg6[%c26, %c0_164] : memref<64x128xf32, #tpu.memory_space<vmem>>, vector<1x128xf32>
    tpu.vector_store %arg6[%c26, %c0_164], %191 {strides = array<i32>} : memref<64x128xf32, #tpu.memory_space<vmem>>, vector<1x128xf32>,
    %193 = arith.index_cast %arg0 : i32 to index
    %c3_165 = arith.constant 3 : index
    %c3_166 = arith.constant 3 : index
    %194 = memref.load %arg1[%193, %c3_165, %c3_166] : memref<3x8x8xi32, #tpu.memory_space<smem>>
    %c0_i32_167 = arith.constant 0 : i32
    %c255_i32_168 = arith.constant 255 : i32
    %195 = arith.maxsi %c0_i32_167, %194 : i32
    %196 = arith.minsi %c255_i32_168, %195 : i32
    %197 = arith.index_cast %196 : i32 to index
    %c0_169 = arith.constant 0 : index
    %198 = vector.load %arg5[%197, %c0_169] : memref<256x128xf32, #tpu.memory_space<vmem>>, vector<1x128xf32>
    %c27 = arith.constant 27 : index
    %c0_170 = arith.constant 0 : index
    %199 = vector.load %arg6[%c27, %c0_170] : memref<64x128xf32, #tpu.memory_space<vmem>>, vector<1x128xf32>
    tpu.vector_store %arg6[%c27, %c0_170], %198 {strides = array<i32>} : memref<64x128xf32, #tpu.memory_space<vmem>>, vector<1x128xf32>,
    %200 = arith.index_cast %arg0 : i32 to index
    %c3_171 = arith.constant 3 : index
    %c4_172 = arith.constant 4 : index
    %201 = memref.load %arg1[%200, %c3_171, %c4_172] : memref<3x8x8xi32, #tpu.memory_space<smem>>
    %c0_i32_173 = arith.constant 0 : i32
    %c255_i32_174 = arith.constant 255 : i32
    %202 = arith.maxsi %c0_i32_173, %201 : i32
    %203 = arith.minsi %c255_i32_174, %202 : i32
    %204 = arith.index_cast %203 : i32 to index
    %c0_175 = arith.constant 0 : index
    %205 = vector.load %arg5[%204, %c0_175] : memref<256x128xf32, #tpu.memory_space<vmem>>, vector<1x128xf32>
    %c28 = arith.constant 28 : index
    %c0_176 = arith.constant 0 : index
    %206 = vector.load %arg6[%c28, %c0_176] : memref<64x128xf32, #tpu.memory_space<vmem>>, vector<1x128xf32>
    tpu.vector_store %arg6[%c28, %c0_176], %205 {strides = array<i32>} : memref<64x128xf32, #tpu.memory_space<vmem>>, vector<1x128xf32>,
    %207 = arith.index_cast %arg0 : i32 to index
    %c3_177 = arith.constant 3 : index
    %c5_178 = arith.constant 5 : index
    %208 = memref.load %arg1[%207, %c3_177, %c5_178] : memref<3x8x8xi32, #tpu.memory_space<smem>>
    %c0_i32_179 = arith.constant 0 : i32
    %c255_i32_180 = arith.constant 255 : i32
    %209 = arith.maxsi %c0_i32_179, %208 : i32
    %210 = arith.minsi %c255_i32_180, %209 : i32
    %211 = arith.index_cast %210 : i32 to index
    %c0_181 = arith.constant 0 : index
    %212 = vector.load %arg5[%211, %c0_181] : memref<256x128xf32, #tpu.memory_space<vmem>>, vector<1x128xf32>
    %c29 = arith.constant 29 : index
    %c0_182 = arith.constant 0 : index
    %213 = vector.load %arg6[%c29, %c0_182] : memref<64x128xf32, #tpu.memory_space<vmem>>, vector<1x128xf32>
    tpu.vector_store %arg6[%c29, %c0_182], %212 {strides = array<i32>} : memref<64x128xf32, #tpu.memory_space<vmem>>, vector<1x128xf32>,
    %214 = arith.index_cast %arg0 : i32 to index
    %c3_183 = arith.constant 3 : index
    %c6_184 = arith.constant 6 : index
    %215 = memref.load %arg1[%214, %c3_183, %c6_184] : memref<3x8x8xi32, #tpu.memory_space<smem>>
    %c0_i32_185 = arith.constant 0 : i32
    %c255_i32_186 = arith.constant 255 : i32
    %216 = arith.maxsi %c0_i32_185, %215 : i32
    %217 = arith.minsi %c255_i32_186, %216 : i32
    %218 = arith.index_cast %217 : i32 to index
    %c0_187 = arith.constant 0 : index
    %219 = vector.load %arg5[%218, %c0_187] : memref<256x128xf32, #tpu.memory_space<vmem>>, vector<1x128xf32>
    %c30 = arith.constant 30 : index
    %c0_188 = arith.constant 0 : index
    %220 = vector.load %arg6[%c30, %c0_188] : memref<64x128xf32, #tpu.memory_space<vmem>>, vector<1x128xf32>
    tpu.vector_store %arg6[%c30, %c0_188], %219 {strides = array<i32>} : memref<64x128xf32, #tpu.memory_space<vmem>>, vector<1x128xf32>,
    %221 = arith.index_cast %arg0 : i32 to index
    %c3_189 = arith.constant 3 : index
    %c7_190 = arith.constant 7 : index
    %222 = memref.load %arg1[%221, %c3_189, %c7_190] : memref<3x8x8xi32, #tpu.memory_space<smem>>
    %c0_i32_191 = arith.constant 0 : i32
    %c255_i32_192 = arith.constant 255 : i32
    %223 = arith.maxsi %c0_i32_191, %222 : i32
    %224 = arith.minsi %c255_i32_192, %223 : i32
    %225 = arith.index_cast %224 : i32 to index
    %c0_193 = arith.constant 0 : index
    %226 = vector.load %arg5[%225, %c0_193] : memref<256x128xf32, #tpu.memory_space<vmem>>, vector<1x128xf32>
    %c31 = arith.constant 31 : index
    %c0_194 = arith.constant 0 : index
    %227 = vector.load %arg6[%c31, %c0_194] : memref<64x128xf32, #tpu.memory_space<vmem>>, vector<1x128xf32>
    tpu.vector_store %arg6[%c31, %c0_194], %226 {strides = array<i32>} : memref<64x128xf32, #tpu.memory_space<vmem>>, vector<1x128xf32>,
    %228 = arith.index_cast %arg0 : i32 to index
    %c4_195 = arith.constant 4 : index
    %c0_196 = arith.constant 0 : index
    %229 = memref.load %arg1[%228, %c4_195, %c0_196] : memref<3x8x8xi32, #tpu.memory_space<smem>>
    %c0_i32_197 = arith.constant 0 : i32
    %c255_i32_198 = arith.constant 255 : i32
    %230 = arith.maxsi %c0_i32_197, %229 : i32
    %231 = arith.minsi %c255_i32_198, %230 : i32
    %232 = arith.index_cast %231 : i32 to index
    %c0_199 = arith.constant 0 : index
    %233 = vector.load %arg5[%232, %c0_199] : memref<256x128xf32, #tpu.memory_space<vmem>>, vector<1x128xf32>
    %c32 = arith.constant 32 : index
    %c0_200 = arith.constant 0 : index
    %234 = vector.load %arg6[%c32, %c0_200] : memref<64x128xf32, #tpu.memory_space<vmem>>, vector<1x128xf32>
    tpu.vector_store %arg6[%c32, %c0_200], %233 {strides = array<i32>} : memref<64x128xf32, #tpu.memory_space<vmem>>, vector<1x128xf32>,
    %235 = arith.index_cast %arg0 : i32 to index
    %c4_201 = arith.constant 4 : index
    %c1_202 = arith.constant 1 : index
    %236 = memref.load %arg1[%235, %c4_201, %c1_202] : memref<3x8x8xi32, #tpu.memory_space<smem>>
    %c0_i32_203 = arith.constant 0 : i32
    %c255_i32_204 = arith.constant 255 : i32
    %237 = arith.maxsi %c0_i32_203, %236 : i32
    %238 = arith.minsi %c255_i32_204, %237 : i32
    %239 = arith.index_cast %238 : i32 to index
    %c0_205 = arith.constant 0 : index
    %240 = vector.load %arg5[%239, %c0_205] : memref<256x128xf32, #tpu.memory_space<vmem>>, vector<1x128xf32>
    %c33 = arith.constant 33 : index
    %c0_206 = arith.constant 0 : index
    %241 = vector.load %arg6[%c33, %c0_206] : memref<64x128xf32, #tpu.memory_space<vmem>>, vector<1x128xf32>
    tpu.vector_store %arg6[%c33, %c0_206], %240 {strides = array<i32>} : memref<64x128xf32, #tpu.memory_space<vmem>>, vector<1x128xf32>,
    %242 = arith.index_cast %arg0 : i32 to index
    %c4_207 = arith.constant 4 : index
    %c2_208 = arith.constant 2 : index
    %243 = memref.load %arg1[%242, %c4_207, %c2_208] : memref<3x8x8xi32, #tpu.memory_space<smem>>
    %c0_i32_209 = arith.constant 0 : i32
    %c255_i32_210 = arith.constant 255 : i32
    %244 = arith.maxsi %c0_i32_209, %243 : i32
    %245 = arith.minsi %c255_i32_210, %244 : i32
    %246 = arith.index_cast %245 : i32 to index
    %c0_211 = arith.constant 0 : index
    %247 = vector.load %arg5[%246, %c0_211] : memref<256x128xf32, #tpu.memory_space<vmem>>, vector<1x128xf32>
    %c34 = arith.constant 34 : index
    %c0_212 = arith.constant 0 : index
    %248 = vector.load %arg6[%c34, %c0_212] : memref<64x128xf32, #tpu.memory_space<vmem>>, vector<1x128xf32>
    tpu.vector_store %arg6[%c34, %c0_212], %247 {strides = array<i32>} : memref<64x128xf32, #tpu.memory_space<vmem>>, vector<1x128xf32>,
    %249 = arith.index_cast %arg0 : i32 to index
    %c4_213 = arith.constant 4 : index
    %c3_214 = arith.constant 3 : index
    %250 = memref.load %arg1[%249, %c4_213, %c3_214] : memref<3x8x8xi32, #tpu.memory_space<smem>>
    %c0_i32_215 = arith.constant 0 : i32
    %c255_i32_216 = arith.constant 255 : i32
    %251 = arith.maxsi %c0_i32_215, %250 : i32
    %252 = arith.minsi %c255_i32_216, %251 : i32
    %253 = arith.index_cast %252 : i32 to index
    %c0_217 = arith.constant 0 : index
    %254 = vector.load %arg5[%253, %c0_217] : memref<256x128xf32, #tpu.memory_space<vmem>>, vector<1x128xf32>
    %c35 = arith.constant 35 : index
    %c0_218 = arith.constant 0 : index
    %255 = vector.load %arg6[%c35, %c0_218] : memref<64x128xf32, #tpu.memory_space<vmem>>, vector<1x128xf32>
    tpu.vector_store %arg6[%c35, %c0_218], %254 {strides = array<i32>} : memref<64x128xf32, #tpu.memory_space<vmem>>, vector<1x128xf32>,
    %256 = arith.index_cast %arg0 : i32 to index
    %c4_219 = arith.constant 4 : index
    %c4_220 = arith.constant 4 : index
    %257 = memref.load %arg1[%256, %c4_219, %c4_220] : memref<3x8x8xi32, #tpu.memory_space<smem>>
    %c0_i32_221 = arith.constant 0 : i32
    %c255_i32_222 = arith.constant 255 : i32
    %258 = arith.maxsi %c0_i32_221, %257 : i32
    %259 = arith.minsi %c255_i32_222, %258 : i32
    %260 = arith.index_cast %259 : i32 to index
    %c0_223 = arith.constant 0 : index
    %261 = vector.load %arg5[%260, %c0_223] : memref<256x128xf32, #tpu.memory_space<vmem>>, vector<1x128xf32>
    %c36 = arith.constant 36 : index
    %c0_224 = arith.constant 0 : index
    %262 = vector.load %arg6[%c36, %c0_224] : memref<64x128xf32, #tpu.memory_space<vmem>>, vector<1x128xf32>
    tpu.vector_store %arg6[%c36, %c0_224], %261 {strides = array<i32>} : memref<64x128xf32, #tpu.memory_space<vmem>>, vector<1x128xf32>,
    %263 = arith.index_cast %arg0 : i32 to index
    %c4_225 = arith.constant 4 : index
    %c5_226 = arith.constant 5 : index
    %264 = memref.load %arg1[%263, %c4_225, %c5_226] : memref<3x8x8xi32, #tpu.memory_space<smem>>
    %c0_i32_227 = arith.constant 0 : i32
    %c255_i32_228 = arith.constant 255 : i32
    %265 = arith.maxsi %c0_i32_227, %264 : i32
    %266 = arith.minsi %c255_i32_228, %265 : i32
    %267 = arith.index_cast %266 : i32 to index
    %c0_229 = arith.constant 0 : index
    %268 = vector.load %arg5[%267, %c0_229] : memref<256x128xf32, #tpu.memory_space<vmem>>, vector<1x128xf32>
    %c37 = arith.constant 37 : index
    %c0_230 = arith.constant 0 : index
    %269 = vector.load %arg6[%c37, %c0_230] : memref<64x128xf32, #tpu.memory_space<vmem>>, vector<1x128xf32>
    tpu.vector_store %arg6[%c37, %c0_230], %268 {strides = array<i32>} : memref<64x128xf32, #tpu.memory_space<vmem>>, vector<1x128xf32>,
    %270 = arith.index_cast %arg0 : i32 to index
    %c4_231 = arith.constant 4 : index
    %c6_232 = arith.constant 6 : index
    %271 = memref.load %arg1[%270, %c4_231, %c6_232] : memref<3x8x8xi32, #tpu.memory_space<smem>>
    %c0_i32_233 = arith.constant 0 : i32
    %c255_i32_234 = arith.constant 255 : i32
    %272 = arith.maxsi %c0_i32_233, %271 : i32
    %273 = arith.minsi %c255_i32_234, %272 : i32
    %274 = arith.index_cast %273 : i32 to index
    %c0_235 = arith.constant 0 : index
    %275 = vector.load %arg5[%274, %c0_235] : memref<256x128xf32, #tpu.memory_space<vmem>>, vector<1x128xf32>
    %c38 = arith.constant 38 : index
    %c0_236 = arith.constant 0 : index
    %276 = vector.load %arg6[%c38, %c0_236] : memref<64x128xf32, #tpu.memory_space<vmem>>, vector<1x128xf32>
    tpu.vector_store %arg6[%c38, %c0_236], %275 {strides = array<i32>} : memref<64x128xf32, #tpu.memory_space<vmem>>, vector<1x128xf32>,
    %277 = arith.index_cast %arg0 : i32 to index
    %c4_237 = arith.constant 4 : index
    %c7_238 = arith.constant 7 : index
    %278 = memref.load %arg1[%277, %c4_237, %c7_238] : memref<3x8x8xi32, #tpu.memory_space<smem>>
    %c0_i32_239 = arith.constant 0 : i32
    %c255_i32_240 = arith.constant 255 : i32
    %279 = arith.maxsi %c0_i32_239, %278 : i32
    %280 = arith.minsi %c255_i32_240, %279 : i32
    %281 = arith.index_cast %280 : i32 to index
    %c0_241 = arith.constant 0 : index
    %282 = vector.load %arg5[%281, %c0_241] : memref<256x128xf32, #tpu.memory_space<vmem>>, vector<1x128xf32>
    %c39 = arith.constant 39 : index
    %c0_242 = arith.constant 0 : index
    %283 = vector.load %arg6[%c39, %c0_242] : memref<64x128xf32, #tpu.memory_space<vmem>>, vector<1x128xf32>
    tpu.vector_store %arg6[%c39, %c0_242], %282 {strides = array<i32>} : memref<64x128xf32, #tpu.memory_space<vmem>>, vector<1x128xf32>,
    %284 = arith.index_cast %arg0 : i32 to index
    %c5_243 = arith.constant 5 : index
    %c0_244 = arith.constant 0 : index
    %285 = memref.load %arg1[%284, %c5_243, %c0_244] : memref<3x8x8xi32, #tpu.memory_space<smem>>
    %c0_i32_245 = arith.constant 0 : i32
    %c255_i32_246 = arith.constant 255 : i32
    %286 = arith.maxsi %c0_i32_245, %285 : i32
    %287 = arith.minsi %c255_i32_246, %286 : i32
    %288 = arith.index_cast %287 : i32 to index
    %c0_247 = arith.constant 0 : index
    %289 = vector.load %arg5[%288, %c0_247] : memref<256x128xf32, #tpu.memory_space<vmem>>, vector<1x128xf32>
    %c40 = arith.constant 40 : index
    %c0_248 = arith.constant 0 : index
    %290 = vector.load %arg6[%c40, %c0_248] : memref<64x128xf32, #tpu.memory_space<vmem>>, vector<1x128xf32>
    tpu.vector_store %arg6[%c40, %c0_248], %289 {strides = array<i32>} : memref<64x128xf32, #tpu.memory_space<vmem>>, vector<1x128xf32>,
    %291 = arith.index_cast %arg0 : i32 to index
    %c5_249 = arith.constant 5 : index
    %c1_250 = arith.constant 1 : index
    %292 = memref.load %arg1[%291, %c5_249, %c1_250] : memref<3x8x8xi32, #tpu.memory_space<smem>>
    %c0_i32_251 = arith.constant 0 : i32
    %c255_i32_252 = arith.constant 255 : i32
    %293 = arith.maxsi %c0_i32_251, %292 : i32
    %294 = arith.minsi %c255_i32_252, %293 : i32
    %295 = arith.index_cast %294 : i32 to index
    %c0_253 = arith.constant 0 : index
    %296 = vector.load %arg5[%295, %c0_253] : memref<256x128xf32, #tpu.memory_space<vmem>>, vector<1x128xf32>
    %c41 = arith.constant 41 : index
    %c0_254 = arith.constant 0 : index
    %297 = vector.load %arg6[%c41, %c0_254] : memref<64x128xf32, #tpu.memory_space<vmem>>, vector<1x128xf32>
    tpu.vector_store %arg6[%c41, %c0_254], %296 {strides = array<i32>} : memref<64x128xf32, #tpu.memory_space<vmem>>, vector<1x128xf32>,
    %298 = arith.index_cast %arg0 : i32 to index
    %c5_255 = arith.constant 5 : index
    %c2_256 = arith.constant 2 : index
    %299 = memref.load %arg1[%298, %c5_255, %c2_256] : memref<3x8x8xi32, #tpu.memory_space<smem>>
    %c0_i32_257 = arith.constant 0 : i32
    %c255_i32_258 = arith.constant 255 : i32
    %300 = arith.maxsi %c0_i32_257, %299 : i32
    %301 = arith.minsi %c255_i32_258, %300 : i32
    %302 = arith.index_cast %301 : i32 to index
    %c0_259 = arith.constant 0 : index
    %303 = vector.load %arg5[%302, %c0_259] : memref<256x128xf32, #tpu.memory_space<vmem>>, vector<1x128xf32>
    %c42 = arith.constant 42 : index
    %c0_260 = arith.constant 0 : index
    %304 = vector.load %arg6[%c42, %c0_260] : memref<64x128xf32, #tpu.memory_space<vmem>>, vector<1x128xf32>
    tpu.vector_store %arg6[%c42, %c0_260], %303 {strides = array<i32>} : memref<64x128xf32, #tpu.memory_space<vmem>>, vector<1x128xf32>,
    %305 = arith.index_cast %arg0 : i32 to index
    %c5_261 = arith.constant 5 : index
    %c3_262 = arith.constant 3 : index
    %306 = memref.load %arg1[%305, %c5_261, %c3_262] : memref<3x8x8xi32, #tpu.memory_space<smem>>
    %c0_i32_263 = arith.constant 0 : i32
    %c255_i32_264 = arith.constant 255 : i32
    %307 = arith.maxsi %c0_i32_263, %306 : i32
    %308 = arith.minsi %c255_i32_264, %307 : i32
    %309 = arith.index_cast %308 : i32 to index
    %c0_265 = arith.constant 0 : index
    %310 = vector.load %arg5[%309, %c0_265] : memref<256x128xf32, #tpu.memory_space<vmem>>, vector<1x128xf32>
    %c43 = arith.constant 43 : index
    %c0_266 = arith.constant 0 : index
    %311 = vector.load %arg6[%c43, %c0_266] : memref<64x128xf32, #tpu.memory_space<vmem>>, vector<1x128xf32>
    tpu.vector_store %arg6[%c43, %c0_266], %310 {strides = array<i32>} : memref<64x128xf32, #tpu.memory_space<vmem>>, vector<1x128xf32>,
    %312 = arith.index_cast %arg0 : i32 to index
    %c5_267 = arith.constant 5 : index
    %c4_268 = arith.constant 4 : index
    %313 = memref.load %arg1[%312, %c5_267, %c4_268] : memref<3x8x8xi32, #tpu.memory_space<smem>>
    %c0_i32_269 = arith.constant 0 : i32
    %c255_i32_270 = arith.constant 255 : i32
    %314 = arith.maxsi %c0_i32_269, %313 : i32
    %315 = arith.minsi %c255_i32_270, %314 : i32
    %316 = arith.index_cast %315 : i32 to index
    %c0_271 = arith.constant 0 : index
    %317 = vector.load %arg5[%316, %c0_271] : memref<256x128xf32, #tpu.memory_space<vmem>>, vector<1x128xf32>
    %c44 = arith.constant 44 : index
    %c0_272 = arith.constant 0 : index
    %318 = vector.load %arg6[%c44, %c0_272] : memref<64x128xf32, #tpu.memory_space<vmem>>, vector<1x128xf32>
    tpu.vector_store %arg6[%c44, %c0_272], %317 {strides = array<i32>} : memref<64x128xf32, #tpu.memory_space<vmem>>, vector<1x128xf32>,
    %319 = arith.index_cast %arg0 : i32 to index
    %c5_273 = arith.constant 5 : index
    %c5_274 = arith.constant 5 : index
    %320 = memref.load %arg1[%319, %c5_273, %c5_274] : memref<3x8x8xi32, #tpu.memory_space<smem>>
    %c0_i32_275 = arith.constant 0 : i32
    %c255_i32_276 = arith.constant 255 : i32
    %321 = arith.maxsi %c0_i32_275, %320 : i32
    %322 = arith.minsi %c255_i32_276, %321 : i32
    %323 = arith.index_cast %322 : i32 to index
    %c0_277 = arith.constant 0 : index
    %324 = vector.load %arg5[%323, %c0_277] : memref<256x128xf32, #tpu.memory_space<vmem>>, vector<1x128xf32>
    %c45 = arith.constant 45 : index
    %c0_278 = arith.constant 0 : index
    %325 = vector.load %arg6[%c45, %c0_278] : memref<64x128xf32, #tpu.memory_space<vmem>>, vector<1x128xf32>
    tpu.vector_store %arg6[%c45, %c0_278], %324 {strides = array<i32>} : memref<64x128xf32, #tpu.memory_space<vmem>>, vector<1x128xf32>,
    %326 = arith.index_cast %arg0 : i32 to index
    %c5_279 = arith.constant 5 : index
    %c6_280 = arith.constant 6 : index
    %327 = memref.load %arg1[%326, %c5_279, %c6_280] : memref<3x8x8xi32, #tpu.memory_space<smem>>
    %c0_i32_281 = arith.constant 0 : i32
    %c255_i32_282 = arith.constant 255 : i32
    %328 = arith.maxsi %c0_i32_281, %327 : i32
    %329 = arith.minsi %c255_i32_282, %328 : i32
    %330 = arith.index_cast %329 : i32 to index
    %c0_283 = arith.constant 0 : index
    %331 = vector.load %arg5[%330, %c0_283] : memref<256x128xf32, #tpu.memory_space<vmem>>, vector<1x128xf32>
    %c46 = arith.constant 46 : index
    %c0_284 = arith.constant 0 : index
    %332 = vector.load %arg6[%c46, %c0_284] : memref<64x128xf32, #tpu.memory_space<vmem>>, vector<1x128xf32>
    tpu.vector_store %arg6[%c46, %c0_284], %331 {strides = array<i32>} : memref<64x128xf32, #tpu.memory_space<vmem>>, vector<1x128xf32>,
    %333 = arith.index_cast %arg0 : i32 to index
    %c5_285 = arith.constant 5 : index
    %c7_286 = arith.constant 7 : index
    %334 = memref.load %arg1[%333, %c5_285, %c7_286] : memref<3x8x8xi32, #tpu.memory_space<smem>>
    %c0_i32_287 = arith.constant 0 : i32
    %c255_i32_288 = arith.constant 255 : i32
    %335 = arith.maxsi %c0_i32_287, %334 : i32
    %336 = arith.minsi %c255_i32_288, %335 : i32
    %337 = arith.index_cast %336 : i32 to index
    %c0_289 = arith.constant 0 : index
    %338 = vector.load %arg5[%337, %c0_289] : memref<256x128xf32, #tpu.memory_space<vmem>>, vector<1x128xf32>
    %c47 = arith.constant 47 : index
    %c0_290 = arith.constant 0 : index
    %339 = vector.load %arg6[%c47, %c0_290] : memref<64x128xf32, #tpu.memory_space<vmem>>, vector<1x128xf32>
    tpu.vector_store %arg6[%c47, %c0_290], %338 {strides = array<i32>} : memref<64x128xf32, #tpu.memory_space<vmem>>, vector<1x128xf32>,
    %340 = arith.index_cast %arg0 : i32 to index
    %c6_291 = arith.constant 6 : index
    %c0_292 = arith.constant 0 : index
    %341 = memref.load %arg1[%340, %c6_291, %c0_292] : memref<3x8x8xi32, #tpu.memory_space<smem>>
    %c0_i32_293 = arith.constant 0 : i32
    %c255_i32_294 = arith.constant 255 : i32
    %342 = arith.maxsi %c0_i32_293, %341 : i32
    %343 = arith.minsi %c255_i32_294, %342 : i32
    %344 = arith.index_cast %343 : i32 to index
    %c0_295 = arith.constant 0 : index
    %345 = vector.load %arg5[%344, %c0_295] : memref<256x128xf32, #tpu.memory_space<vmem>>, vector<1x128xf32>
    %c48 = arith.constant 48 : index
    %c0_296 = arith.constant 0 : index
    %346 = vector.load %arg6[%c48, %c0_296] : memref<64x128xf32, #tpu.memory_space<vmem>>, vector<1x128xf32>
    tpu.vector_store %arg6[%c48, %c0_296], %345 {strides = array<i32>} : memref<64x128xf32, #tpu.memory_space<vmem>>, vector<1x128xf32>,
    %347 = arith.index_cast %arg0 : i32 to index
    %c6_297 = arith.constant 6 : index
    %c1_298 = arith.constant 1 : index
    %348 = memref.load %arg1[%347, %c6_297, %c1_298] : memref<3x8x8xi32, #tpu.memory_space<smem>>
    %c0_i32_299 = arith.constant 0 : i32
    %c255_i32_300 = arith.constant 255 : i32
    %349 = arith.maxsi %c0_i32_299, %348 : i32
    %350 = arith.minsi %c255_i32_300, %349 : i32
    %351 = arith.index_cast %350 : i32 to index
    %c0_301 = arith.constant 0 : index
    %352 = vector.load %arg5[%351, %c0_301] : memref<256x128xf32, #tpu.memory_space<vmem>>, vector<1x128xf32>
    %c49 = arith.constant 49 : index
    %c0_302 = arith.constant 0 : index
    %353 = vector.load %arg6[%c49, %c0_302] : memref<64x128xf32, #tpu.memory_space<vmem>>, vector<1x128xf32>
    tpu.vector_store %arg6[%c49, %c0_302], %352 {strides = array<i32>} : memref<64x128xf32, #tpu.memory_space<vmem>>, vector<1x128xf32>,
    %354 = arith.index_cast %arg0 : i32 to index
    %c6_303 = arith.constant 6 : index
    %c2_304 = arith.constant 2 : index
    %355 = memref.load %arg1[%354, %c6_303, %c2_304] : memref<3x8x8xi32, #tpu.memory_space<smem>>
    %c0_i32_305 = arith.constant 0 : i32
    %c255_i32_306 = arith.constant 255 : i32
    %356 = arith.maxsi %c0_i32_305, %355 : i32
    %357 = arith.minsi %c255_i32_306, %356 : i32
    %358 = arith.index_cast %357 : i32 to index
    %c0_307 = arith.constant 0 : index
    %359 = vector.load %arg5[%358, %c0_307] : memref<256x128xf32, #tpu.memory_space<vmem>>, vector<1x128xf32>
    %c50 = arith.constant 50 : index
    %c0_308 = arith.constant 0 : index
    %360 = vector.load %arg6[%c50, %c0_308] : memref<64x128xf32, #tpu.memory_space<vmem>>, vector<1x128xf32>
    tpu.vector_store %arg6[%c50, %c0_308], %359 {strides = array<i32>} : memref<64x128xf32, #tpu.memory_space<vmem>>, vector<1x128xf32>,
    %361 = arith.index_cast %arg0 : i32 to index
    %c6_309 = arith.constant 6 : index
    %c3_310 = arith.constant 3 : index
    %362 = memref.load %arg1[%361, %c6_309, %c3_310] : memref<3x8x8xi32, #tpu.memory_space<smem>>
    %c0_i32_311 = arith.constant 0 : i32
    %c255_i32_312 = arith.constant 255 : i32
    %363 = arith.maxsi %c0_i32_311, %362 : i32
    %364 = arith.minsi %c255_i32_312, %363 : i32
    %365 = arith.index_cast %364 : i32 to index
    %c0_313 = arith.constant 0 : index
    %366 = vector.load %arg5[%365, %c0_313] : memref<256x128xf32, #tpu.memory_space<vmem>>, vector<1x128xf32>
    %c51 = arith.constant 51 : index
    %c0_314 = arith.constant 0 : index
    %367 = vector.load %arg6[%c51, %c0_314] : memref<64x128xf32, #tpu.memory_space<vmem>>, vector<1x128xf32>
    tpu.vector_store %arg6[%c51, %c0_314], %366 {strides = array<i32>} : memref<64x128xf32, #tpu.memory_space<vmem>>, vector<1x128xf32>,
    %368 = arith.index_cast %arg0 : i32 to index
    %c6_315 = arith.constant 6 : index
    %c4_316 = arith.constant 4 : index
    %369 = memref.load %arg1[%368, %c6_315, %c4_316] : memref<3x8x8xi32, #tpu.memory_space<smem>>
    %c0_i32_317 = arith.constant 0 : i32
    %c255_i32_318 = arith.constant 255 : i32
    %370 = arith.maxsi %c0_i32_317, %369 : i32
    %371 = arith.minsi %c255_i32_318, %370 : i32
    %372 = arith.index_cast %371 : i32 to index
    %c0_319 = arith.constant 0 : index
    %373 = vector.load %arg5[%372, %c0_319] : memref<256x128xf32, #tpu.memory_space<vmem>>, vector<1x128xf32>
    %c52 = arith.constant 52 : index
    %c0_320 = arith.constant 0 : index
    %374 = vector.load %arg6[%c52, %c0_320] : memref<64x128xf32, #tpu.memory_space<vmem>>, vector<1x128xf32>
    tpu.vector_store %arg6[%c52, %c0_320], %373 {strides = array<i32>} : memref<64x128xf32, #tpu.memory_space<vmem>>, vector<1x128xf32>,
    %375 = arith.index_cast %arg0 : i32 to index
    %c6_321 = arith.constant 6 : index
    %c5_322 = arith.constant 5 : index
    %376 = memref.load %arg1[%375, %c6_321, %c5_322] : memref<3x8x8xi32, #tpu.memory_space<smem>>
    %c0_i32_323 = arith.constant 0 : i32
    %c255_i32_324 = arith.constant 255 : i32
    %377 = arith.maxsi %c0_i32_323, %376 : i32
    %378 = arith.minsi %c255_i32_324, %377 : i32
    %379 = arith.index_cast %378 : i32 to index
    %c0_325 = arith.constant 0 : index
    %380 = vector.load %arg5[%379, %c0_325] : memref<256x128xf32, #tpu.memory_space<vmem>>, vector<1x128xf32>
    %c53 = arith.constant 53 : index
    %c0_326 = arith.constant 0 : index
    %381 = vector.load %arg6[%c53, %c0_326] : memref<64x128xf32, #tpu.memory_space<vmem>>, vector<1x128xf32>
    tpu.vector_store %arg6[%c53, %c0_326], %380 {strides = array<i32>} : memref<64x128xf32, #tpu.memory_space<vmem>>, vector<1x128xf32>,
    %382 = arith.index_cast %arg0 : i32 to index
    %c6_327 = arith.constant 6 : index
    %c6_328 = arith.constant 6 : index
    %383 = memref.load %arg1[%382, %c6_327, %c6_328] : memref<3x8x8xi32, #tpu.memory_space<smem>>
    %c0_i32_329 = arith.constant 0 : i32
    %c255_i32_330 = arith.constant 255 : i32
    %384 = arith.maxsi %c0_i32_329, %383 : i32
    %385 = arith.minsi %c255_i32_330, %384 : i32
    %386 = arith.index_cast %385 : i32 to index
    %c0_331 = arith.constant 0 : index
    %387 = vector.load %arg5[%386, %c0_331] : memref<256x128xf32, #tpu.memory_space<vmem>>, vector<1x128xf32>
    %c54 = arith.constant 54 : index
    %c0_332 = arith.constant 0 : index
    %388 = vector.load %arg6[%c54, %c0_332] : memref<64x128xf32, #tpu.memory_space<vmem>>, vector<1x128xf32>
    tpu.vector_store %arg6[%c54, %c0_332], %387 {strides = array<i32>} : memref<64x128xf32, #tpu.memory_space<vmem>>, vector<1x128xf32>,
    %389 = arith.index_cast %arg0 : i32 to index
    %c6_333 = arith.constant 6 : index
    %c7_334 = arith.constant 7 : index
    %390 = memref.load %arg1[%389, %c6_333, %c7_334] : memref<3x8x8xi32, #tpu.memory_space<smem>>
    %c0_i32_335 = arith.constant 0 : i32
    %c255_i32_336 = arith.constant 255 : i32
    %391 = arith.maxsi %c0_i32_335, %390 : i32
    %392 = arith.minsi %c255_i32_336, %391 : i32
    %393 = arith.index_cast %392 : i32 to index
    %c0_337 = arith.constant 0 : index
    %394 = vector.load %arg5[%393, %c0_337] : memref<256x128xf32, #tpu.memory_space<vmem>>, vector<1x128xf32>
    %c55 = arith.constant 55 : index
    %c0_338 = arith.constant 0 : index
    %395 = vector.load %arg6[%c55, %c0_338] : memref<64x128xf32, #tpu.memory_space<vmem>>, vector<1x128xf32>
    tpu.vector_store %arg6[%c55, %c0_338], %394 {strides = array<i32>} : memref<64x128xf32, #tpu.memory_space<vmem>>, vector<1x128xf32>,
    %396 = arith.index_cast %arg0 : i32 to index
    %c7_339 = arith.constant 7 : index
    %c0_340 = arith.constant 0 : index
    %397 = memref.load %arg1[%396, %c7_339, %c0_340] : memref<3x8x8xi32, #tpu.memory_space<smem>>
    %c0_i32_341 = arith.constant 0 : i32
    %c255_i32_342 = arith.constant 255 : i32
    %398 = arith.maxsi %c0_i32_341, %397 : i32
    %399 = arith.minsi %c255_i32_342, %398 : i32
    %400 = arith.index_cast %399 : i32 to index
    %c0_343 = arith.constant 0 : index
    %401 = vector.load %arg5[%400, %c0_343] : memref<256x128xf32, #tpu.memory_space<vmem>>, vector<1x128xf32>
    %c56 = arith.constant 56 : index
    %c0_344 = arith.constant 0 : index
    %402 = vector.load %arg6[%c56, %c0_344] : memref<64x128xf32, #tpu.memory_space<vmem>>, vector<1x128xf32>
    tpu.vector_store %arg6[%c56, %c0_344], %401 {strides = array<i32>} : memref<64x128xf32, #tpu.memory_space<vmem>>, vector<1x128xf32>,
    %403 = arith.index_cast %arg0 : i32 to index
    %c7_345 = arith.constant 7 : index
    %c1_346 = arith.constant 1 : index
    %404 = memref.load %arg1[%403, %c7_345, %c1_346] : memref<3x8x8xi32, #tpu.memory_space<smem>>
    %c0_i32_347 = arith.constant 0 : i32
    %c255_i32_348 = arith.constant 255 : i32
    %405 = arith.maxsi %c0_i32_347, %404 : i32
    %406 = arith.minsi %c255_i32_348, %405 : i32
    %407 = arith.index_cast %406 : i32 to index
    %c0_349 = arith.constant 0 : index
    %408 = vector.load %arg5[%407, %c0_349] : memref<256x128xf32, #tpu.memory_space<vmem>>, vector<1x128xf32>
    %c57 = arith.constant 57 : index
    %c0_350 = arith.constant 0 : index
    %409 = vector.load %arg6[%c57, %c0_350] : memref<64x128xf32, #tpu.memory_space<vmem>>, vector<1x128xf32>
    tpu.vector_store %arg6[%c57, %c0_350], %408 {strides = array<i32>} : memref<64x128xf32, #tpu.memory_space<vmem>>, vector<1x128xf32>,
    %410 = arith.index_cast %arg0 : i32 to index
    %c7_351 = arith.constant 7 : index
    %c2_352 = arith.constant 2 : index
    %411 = memref.load %arg1[%410, %c7_351, %c2_352] : memref<3x8x8xi32, #tpu.memory_space<smem>>
    %c0_i32_353 = arith.constant 0 : i32
    %c255_i32_354 = arith.constant 255 : i32
    %412 = arith.maxsi %c0_i32_353, %411 : i32
    %413 = arith.minsi %c255_i32_354, %412 : i32
    %414 = arith.index_cast %413 : i32 to index
    %c0_355 = arith.constant 0 : index
    %415 = vector.load %arg5[%414, %c0_355] : memref<256x128xf32, #tpu.memory_space<vmem>>, vector<1x128xf32>
    %c58 = arith.constant 58 : index
    %c0_356 = arith.constant 0 : index
    %416 = vector.load %arg6[%c58, %c0_356] : memref<64x128xf32, #tpu.memory_space<vmem>>, vector<1x128xf32>
    tpu.vector_store %arg6[%c58, %c0_356], %415 {strides = array<i32>} : memref<64x128xf32, #tpu.memory_space<vmem>>, vector<1x128xf32>,
    %417 = arith.index_cast %arg0 : i32 to index
    %c7_357 = arith.constant 7 : index
    %c3_358 = arith.constant 3 : index
    %418 = memref.load %arg1[%417, %c7_357, %c3_358] : memref<3x8x8xi32, #tpu.memory_space<smem>>
    %c0_i32_359 = arith.constant 0 : i32
    %c255_i32_360 = arith.constant 255 : i32
    %419 = arith.maxsi %c0_i32_359, %418 : i32
    %420 = arith.minsi %c255_i32_360, %419 : i32
    %421 = arith.index_cast %420 : i32 to index
    %c0_361 = arith.constant 0 : index
    %422 = vector.load %arg5[%421, %c0_361] : memref<256x128xf32, #tpu.memory_space<vmem>>, vector<1x128xf32>
    %c59 = arith.constant 59 : index
    %c0_362 = arith.constant 0 : index
    %423 = vector.load %arg6[%c59, %c0_362] : memref<64x128xf32, #tpu.memory_space<vmem>>, vector<1x128xf32>
    tpu.vector_store %arg6[%c59, %c0_362], %422 {strides = array<i32>} : memref<64x128xf32, #tpu.memory_space<vmem>>, vector<1x128xf32>,
    %424 = arith.index_cast %arg0 : i32 to index
    %c7_363 = arith.constant 7 : index
    %c4_364 = arith.constant 4 : index
    %425 = memref.load %arg1[%424, %c7_363, %c4_364] : memref<3x8x8xi32, #tpu.memory_space<smem>>
    %c0_i32_365 = arith.constant 0 : i32
    %c255_i32_366 = arith.constant 255 : i32
    %426 = arith.maxsi %c0_i32_365, %425 : i32
    %427 = arith.minsi %c255_i32_366, %426 : i32
    %428 = arith.index_cast %427 : i32 to index
    %c0_367 = arith.constant 0 : index
    %429 = vector.load %arg5[%428, %c0_367] : memref<256x128xf32, #tpu.memory_space<vmem>>, vector<1x128xf32>
    %c60 = arith.constant 60 : index
    %c0_368 = arith.constant 0 : index
    %430 = vector.load %arg6[%c60, %c0_368] : memref<64x128xf32, #tpu.memory_space<vmem>>, vector<1x128xf32>
    tpu.vector_store %arg6[%c60, %c0_368], %429 {strides = array<i32>} : memref<64x128xf32, #tpu.memory_space<vmem>>, vector<1x128xf32>,
    %431 = arith.index_cast %arg0 : i32 to index
    %c7_369 = arith.constant 7 : index
    %c5_370 = arith.constant 5 : index
    %432 = memref.load %arg1[%431, %c7_369, %c5_370] : memref<3x8x8xi32, #tpu.memory_space<smem>>
    %c0_i32_371 = arith.constant 0 : i32
    %c255_i32_372 = arith.constant 255 : i32
    %433 = arith.maxsi %c0_i32_371, %432 : i32
    %434 = arith.minsi %c255_i32_372, %433 : i32
    %435 = arith.index_cast %434 : i32 to index
    %c0_373 = arith.constant 0 : index
    %436 = vector.load %arg5[%435, %c0_373] : memref<256x128xf32, #tpu.memory_space<vmem>>, vector<1x128xf32>
    %c61 = arith.constant 61 : index
    %c0_374 = arith.constant 0 : index
    %437 = vector.load %arg6[%c61, %c0_374] : memref<64x128xf32, #tpu.memory_space<vmem>>, vector<1x128xf32>
    tpu.vector_store %arg6[%c61, %c0_374], %436 {strides = array<i32>} : memref<64x128xf32, #tpu.memory_space<vmem>>, vector<1x128xf32>,
    %438 = arith.index_cast %arg0 : i32 to index
    %c7_375 = arith.constant 7 : index
    %c6_376 = arith.constant 6 : index
    %439 = memref.load %arg1[%438, %c7_375, %c6_376] : memref<3x8x8xi32, #tpu.memory_space<smem>>
    %c0_i32_377 = arith.constant 0 : i32
    %c255_i32_378 = arith.constant 255 : i32
    %440 = arith.maxsi %c0_i32_377, %439 : i32
    %441 = arith.minsi %c255_i32_378, %440 : i32
    %442 = arith.index_cast %441 : i32 to index
    %c0_379 = arith.constant 0 : index
    %443 = vector.load %arg5[%442, %c0_379] : memref<256x128xf32, #tpu.memory_space<vmem>>, vector<1x128xf32>
    %c62 = arith.constant 62 : index
    %c0_380 = arith.constant 0 : index
    %444 = vector.load %arg6[%c62, %c0_380] : memref<64x128xf32, #tpu.memory_space<vmem>>, vector<1x128xf32>
    tpu.vector_store %arg6[%c62, %c0_380], %443 {strides = array<i32>} : memref<64x128xf32, #tpu.memory_space<vmem>>, vector<1x128xf32>,
    %445 = arith.index_cast %arg0 : i32 to index
    %c7_381 = arith.constant 7 : index
    %c7_382 = arith.constant 7 : index
    %446 = memref.load %arg1[%445, %c7_381, %c7_382] : memref<3x8x8xi32, #tpu.memory_space<smem>>
    %c0_i32_383 = arith.constant 0 : i32
    %c255_i32_384 = arith.constant 255 : i32
    %447 = arith.maxsi %c0_i32_383, %446 : i32
    %448 = arith.minsi %c255_i32_384, %447 : i32
    %449 = arith.index_cast %448 : i32 to index
    %c0_385 = arith.constant 0 : index
    %450 = vector.load %arg5[%449, %c0_385] : memref<256x128xf32, #tpu.memory_space<vmem>>, vector<1x128xf32>
    %c63 = arith.constant 63 : index
    %c0_386 = arith.constant 0 : index
    %451 = vector.load %arg6[%c63, %c0_386] : memref<64x128xf32, #tpu.memory_space<vmem>>, vector<1x128xf32>
    tpu.vector_store %arg6[%c63, %c0_386], %450 {strides = array<i32>} : memref<64x128xf32, #tpu.memory_space<vmem>>, vector<1x128xf32>,
    %c0_387 = arith.constant 0 : index
    %c0_388 = arith.constant 0 : index
    %452 = vector.load %arg6[%c0_387, %c0_388] : memref<64x128xf32, #tpu.memory_space<vmem>>, vector<64x128xf32>
    %453 = vector.shape_cast %452 : vector<64x128xf32> to vector<8x8x128xf32>
    %c0_389 = arith.constant 0 : index
    %c0_390 = arith.constant 0 : index
    %c0_391 = arith.constant 0 : index
    %454 = vector.load %arg2[%c0_389, %c0_390, %c0_391] : memref<1x8x8xf32, #tpu.memory_space<vmem>>, vector<1x8x8xf32>
    %455 = vector.shape_cast %454 : vector<1x8x8xf32> to vector<8x8xf32>
    %456 = vector.shape_cast %455 : vector<8x8xf32> to vector<8x8x1xf32>
    %457 = vector.broadcast %456 : vector<8x8x1xf32> to vector<8x8x128xf32>
    %458 = arith.mulf %453, %457 : vector<8x8x128xf32>
    %cst = arith.constant dense<0.000000e+00> : vector<8x128xf32>
    %459 = vector.multi_reduction <add>, %458, %cst [1] : vector<8x8x128xf32> to vector<8x128xf32>
    %c0_392 = arith.constant 0 : index
    %c0_393 = arith.constant 0 : index
    %460 = vector.load %arg4[%c0_392, %c0_393] : memref<8x128xf32, #tpu.memory_space<vmem>>, vector<8x128xf32>
    tpu.vector_store %arg4[%c0_392, %c0_393], %459 {strides = array<i32>} : memref<8x128xf32, #tpu.memory_space<vmem>>, vector<8x128xf32>,
    return
  }
  func.func @transform_0(%arg0: i32, %arg1: memref<3x8x8xi32, #tpu.memory_space<smem>>) -> (i32, i32, i32) {
    %c0_i32 = arith.constant 0 : i32
    %c0_i32_0 = arith.constant 0 : i32
    %c0_i32_1 = arith.constant 0 : i32
    return %arg0, %c0_i32, %c0_i32_0 : i32, i32, i32
  }
  func.func @transform_1(%arg0: i32, %arg1: memref<3x8x8xi32, #tpu.memory_space<smem>>) -> (i32, i32, i32) {
    %c0_i32 = arith.constant 0 : i32
    %c0_i32_0 = arith.constant 0 : i32
    %c0_i32_1 = arith.constant 0 : i32
    return %arg0, %c0_i32, %c0_i32_0 : i32, i32, i32
  }
  func.func @transform_2(%arg0: i32, %arg1: memref<3x8x8xi32, #tpu.memory_space<smem>>) -> (i32, i32) {
    %c0_i32 = arith.constant 0 : i32
    %c0_i32_0 = arith.constant 0 : i32
    return %c0_i32, %arg0 : i32, i32
  }
}

</mosaic_0001>

<bundles_post_ra>
// kernel: pooled_embedding_bag.1
= control target key start
LH: loop header
LB: loop body
LE: loop exit
PB: predicated region body
PF: predicated region fallthrough
CT: control target
= control target key end

     0   :  { %s1988_s15 = smov [#allocation5]   ;;  %s2647_s0 = inlined_call_operand.hbm [shape: s32[3,8,8], index: 0, kind: input, shape index: {}]   ;;  %s2648_s1 = inlined_call_operand.hbm [shape: f32[3,8,8], index: 1, kind: input, shape index: {}]   ;;  %s2649_s2 = inlined_call_operand.hbm [shape: bf16[3,256,128], index: 2, kind: input, shape index: {}]   ;;  %s2650_s3 = inlined_call_operand.hbm [shape: f32[8,384], index: 3, kind: output, shape index: {}]  }
   0x1   :  { %2665 = sst [smem:[#allocation28_spill]] %s2648_s1  ;;  %s9_s14 = sshll.u32 %s2647_s0, 4  ;;  %s10_s14 = int_to_ptr.hbm [resolvable:$true] %s9_s14 }
   0x2   :  { %2666 = sst [smem:[#allocation29_spill]] %s2649_s2 }
   0x3   :  { %2667 = sst [smem:[#allocation30_spill]] %s2650_s3 }
   0x4   :  { %12 = dma.hbm_to_smem %s10_s14, 384, %s1988_s15, [#allocation4] }
   0x5   :  { %1958 = dma.done.wait [#allocation4], 384 }
   0x6   :  { %1959 = vsyncadd [#allocation4], 4294966912 }
   0x7   :  { %15 = sfence }
   0x8   :  { %16 = vsyncpa [#allocation7], 0 }
   0x9   :  { %18 = vsyncpa [#allocation7 + $0x1], 0 }
   0xa   :  { %19 = vsyncpa [#allocation10], 0 }
   0xb   :  { %21 = vsyncpa [#allocation10 + $0x1], 0 }
   0xc   :  { %22 = vsyncpa [#allocation8], 0 }
   0xd   :  { %24 = vsyncpa [#allocation8 + $0x1], 0  ;;  %s2014_s16 = smov 0   ;;  %s2016_s17 = smov 0  }
   0xe   :  { %s2018_s18 = smov 0   ;;  %s2020_s19 = smov 0  }
   0xf LB: > { %2668 = sst [smem:[#allocation16_spill]] %s1974_s16  ;;  %s2035_s0 = sadd.s32 4294967295, %s1986_s19   ;;  %s1986_s19 = sphi %s2020_s19, %s2713_s19   ;;  %s1982_s18 = sphi %s2018_s18, %s2716_s18   ;;  %s1978_s17 = sphi %s2016_s17, %s2715_s17   ;;  %s1974_s16 = sphi %s2014_s16, %s2714_s16  }
  0x10   : > { %2669 = sst [smem:[#allocation17_spill]] %s1978_s17  ;;  %s1210_s20 = sadd.s32 4294967294, %s1986_s19  }
  0x11   : > { %2670 = sst [smem:[#allocation18_spill]] %s1982_s18  ;;  %s2039_s21 = sadd.s32 1, %s1986_s19  }
  0x12   : > { %2671 = sst [smem:[#allocation19_spill]] %s1986_s19  ;;  %s37_s22 = sadd.s32 1, %s1982_s18 }
  0x13   : > { %2672 = sst [smem:[#allocation20_spill]] %s2035_s0  ;;  %s34_s23 = ssub.s32 %s1986_s19, %s2039_s21 }
  0x14   : > { %2673 = sst [smem:[#allocation21_spill]] %s2039_s21  ;;  %p44_p0 = scmp.ne.s32.totalorder %s1982_s18, %s1978_s17 }
  0x15   : > { %p35_p1 = scmp.eq.s32.totalorder %s34_s23, 0  ;;  %p45_p2 = scmp.eq.s32.totalorder %s1986_s19, 0 }
  0x16   : > { %p50_p3 = scmp.ne.s32.totalorder %s1978_s17, %s1974_s16  ;;  %p51_p4 = scmp.eq.s32.totalorder %s2035_s0, 0 }
  0x17   : > { %s2051_s24 = scalar_select %p35_p1, %s1982_s18, %s37_s22  }
  0x18   : > { %p2053_p5 = por %p45_p2, %p44_p0  ;;  %p2057_p6 = por %p51_p4, %p50_p3 }
  0x19   : > { %2674 = sst [smem:[#allocation22_spill]] %s2051_s24  ;;  %p100_p7 = scmp.eq.s32.totalorder %s2035_s0, 2 }
  0x1a   : > { %p106_p8 = scmp.eq.s32.totalorder %s1210_s20, 2  ;;  %p1802_p9 = scmp.lt.s32.totalorder %s1986_s19, 3 }
  0x1b   : > { %p2063_p10 = por %p100_p7, %p44_p0  ;;  %s2072_s29 = sand.u32 1, %s1982_s18  }
  0x1c   : > { %p2067_p11 = por %p106_p8, %p50_p3  ;;  %s1214_s30 = sshll.u32 %s1986_s19, 3 }
  0x1d   : > { %s2677_s27 = scalar_select %p2063_p10, 1, 0 }
  0x1e   : > { %s2679_s28 = scalar_select %p2067_p11, 1, 0 }
  0x1f   : > { %2678 = sst [smem:[#allocation23_spill]] %s2677_s27  ;;  %s1213_s4 = sshll.u32 %s2072_s29, 3 }
  0x20   : > { %2680 = sst [smem:[#allocation24_spill]] %s2679_s28  ;;  %s130_s9 = scalar_lea.vmem [#allocation6], %s1213_s4 }
  0x21   : > { %s2681_s1 = sld [smem:[#allocation28_spill]]  ;;  %s138_s10 = sshll.u32 %s130_s9, 4  ;;  %s139_s10 = int_to_ptr.vmem [resolvable:$true] %s138_s10 }
  0x22   : > { %p2081_p12 = pnand %p1802_p9, %p2053_p5  ;;  %p1218_p13 = scmp.ge.s32.totalorder %s1986_s19, 1 }
  0x23   : > { %p165_p0 = scmp.lt.s32.totalorder %s1986_s19, 4  ;;  %s1215_s12 = sshll.u32 %s2072_s29, 7 }
  0x24   : > { %s127_s13 = scalar_lea.sflag [#allocation7], %s2072_s29  ;;  %p1858_p2 = pneg %p2081_p12 }
  0x27   : > { %s134_s7 = scalar_lea.hbm %s2681_s1, %s1214_s30  ;;  %s1861_s23 = scalar_lea.hbm %s2681_s1, 24 }
  0x28   : > { %s136_s8 = sshll.u32 %s134_s7, 4  ;;  %s137_s8 = int_to_ptr.hbm [resolvable:$true] %s136_s8 }
  0x29   : > { %s1854_s14 = sshra.s32 %s137_s8, 4  ;;  %s1855_s14 = int_to_ptr.hbm [resolvable:$true] %s1854_s14 }
  0x2a   : > { %s1856_s15 = scalar_lea.hbm %s1855_s14, 8  ;;  %p1862_p5 = scmp.lt.s32.totalorder %s1855_s14, %s2681_s1 }
  0x2b   : > { %p1857_p1 = scmp.ne.s32.totalorder %s1855_s14, %s1856_s15  ;;  %p1863_p7 = scmp.lt.s32.totalorder %s1861_s23, %s1856_s15 }
  0x2d   : > { %p1859_p3 = pnand %p1858_p2, %p1857_p1  ;;  %p1864_p8 = por %p1863_p7, %p1862_p5 }
  0x2f   : > { %p1860_p4 = pneg %p1859_p3 }
  0x31   : > { %p1865_p9 = pnand %p1864_p8, %p1860_p4 }
  0x33   : > { %1868 = shalt.err (!%p1865_p9)
}
  0x34   : > { %1794 = dma.hbm_to_vmem [thread:$0]  (!%p2081_p12), %s137_s8, 128, %s139_s10, %s127_s13  }
  0x35   : > { %p2106_p1 = pnand %p1218_p13, %p165_p0  ;;  %s1555_s5 = sshll.u32 %s1986_s19, 7 }
  0x36   : > { %s149_s6 = scalar_lea.vmem [#allocation9], %s1215_s12  ;;  %s2684_s2 = sld [smem:[#allocation29_spill]] }
  0x37   : > { %s157_s7 = sshll.u32 %s149_s6, 4  ;;  %s146_s22 = scalar_lea.sflag [#allocation10], %s2072_s29  ;;  %s158_s7 = int_to_ptr.vmem [resolvable:$true] %s157_s7 }
  0x3c   : > { %s154_s15 = scalar_lea.hbm %s2684_s2, %s1555_s5  ;;  %s1891_s12 = scalar_lea.hbm %s2684_s2, 384 }
  0x3d   : > { %s155_s20 = sshll.u32 %s154_s15, 4  ;;  %s156_s20 = int_to_ptr.hbm [resolvable:$true] %s155_s20 }
  0x3e   : > { %s1884_s23 = sshra.s32 %s156_s20, 4  ;;  %s1885_s23 = int_to_ptr.hbm [resolvable:$true] %s1884_s23 }
  0x3f   : > { %s1886_s8 = scalar_lea.hbm %s1885_s23, 128  ;;  %p1892_p4 = scmp.lt.s32.totalorder %s1885_s23, %s2684_s2 }
  0x40   : > { %p1887_p3 = scmp.ne.s32.totalorder %s1885_s23, %s1886_s8  ;;  %p1893_p5 = scmp.lt.s32.totalorder %s1891_s12, %s1886_s8 }
  0x42   : > { %p1889_p13 = pnand %p1887_p3, %p1858_p2  ;;  %p1894_p7 = por %p1893_p5, %p1892_p4 }
  0x44   : > { %p1890_p0 = pneg %p1889_p13 }
  0x46   : > { %p1895_p8 = pnand %p1894_p7, %p1890_p0 }
  0x48   : > { %1898 = shalt.err (!%p1895_p8)
}
  0x49   : > { %s1989_s29 = smov 64   ;;  %s1990_s5 = smov 4  }
  0x4a   : > { %1797 = dma.hbm_to_vmem [thread:$0]  (!%p2081_p12), %s156_s20, 2048, %s158_s7, %s146_s22, %s1989_s29, %s1989_s29, %s1990_s5  }
  0x4b   : > { %169 = sbr.rel (%p2106_p1) target bundleno = 361 (0x169), region = 28 }
  0x50   : > { %s2129_s6 = sand.u32 1, %s1978_s17  }
  0x51   : > { %2685 = sst [smem:[#allocation25_spill]] %s2129_s6  ;;  %s2651_s9 = sshll.u32 %s2129_s6, 3 }
  0x52   : > { %s172_s14 = scalar_lea.sflag [#allocation7], %s2129_s6  ;;  %s175_s15 = scalar_lea.vmem [#allocation6], %s2651_s9 }
  0x53   : > { %1961 = dma.done.wait (%p2057_p6), %s172_s14, 128  }
  0x54   : > { %1963 = vsyncadd (%p2057_p6), %s172_s14, 4294967168  ;;  %s1220_s11 = sshll.u32 %s2129_s6, 7  ;;  %s182_s4 = scalar_lea.sflag [#allocation10], %s2129_s6 }
  0x55   : > { %s2141_s7 = scalar_lea.vmem [#allocation9], %s1220_s11 }
  0x56   : > { %1965 = dma.done.wait (%p2057_p6), %s182_s4, 2048  }
  0x57   : > { %1967 = vsyncadd (%p2057_p6), %s182_s4, 4294965248  ;;  %v902_v0 = vlaneseq  ;;  %s2148_s20 = sshll.u32 %s2035_s0, 10  ;;  %v900_v2 = vld [vmem:[%s175_s15] sm:$0xff]  ;;  %v1700_v11 = vld [vmem:[%s2141_s7] sm:$0xff]   ;;  %vm1021_vm0 = vcmask 1041409   ;;  %vm1023_vm1 = vcmask 1042434  }
  0x58   : > { %s2151_s22 = sadd.s32 512, %s2148_s20  ;;  %v915_v3 = vperm.slane %v900_v2, 2  ;;  %v901_v4 = vperm.slane %v900_v2, 0  ;;  %v929_v5 = vperm.slane %v900_v2, 4  ;;  %v922_v6 = vperm.slane %v900_v2, 3  ;;  %s2166_s30 = sadd.s32 256, %s2148_s20 }
  0x59   : > { %v903_v1 = vshrl.u32 %v902_v0, 7  ;;  %s610_s23 = sadd.s32 1, %s2151_s22  ;;  %s2155_s26 = sld [smem:[#allocation5 + %s2151_s22]]  ;;  %v908_v7 = vperm.slane %v900_v2, 1  ;;  %v936_v8 = vperm.slane %v900_v2, 5  ;;  %v950_v9 = vperm.slane %v900_v2, 7 }
  0x5a   : > { %s2157_s8 = sld [smem:[#allocation5 + %s610_s23]]  ;;  %s619_s10 = sadd.s32 2, %s2151_s22  ;;  %v943_v10 = vperm.slane %v900_v2, 6  ;;  %v1763_v12 = vld [vmem:[%s2141_s7 + $0x8] sm:$0xff]   ;;  %v1764_v13 = vld [vmem:[%s2141_s7 + $0x10] sm:$0xff]   ;;  %v1701_v14 = vunpack.c.l.bf16 %v1700_v11  ;;  %v1702_v15 = vunpack.c.h.bf16 %v1700_v11  ;;  %v1765_v18 = vld [vmem:[%s2141_s7 + $0x18] sm:$0xff]  }
  0x5b   : > { %1840 = vset.pattern.permute.xlu1 %v903_v1  ;;  %1839 = vset.pattern.permute.xlu0 %v903_v1  ;;  %s628_s13 = sadd.s32 3, %s2151_s22  ;;  %s637_s12 = sadd.s32 4, %s2151_s22  ;;  %v1705_v16 = vunpack.c.l.bf16 %v1763_v12  ;;  %v1706_v17 = vunpack.c.h.bf16 %v1763_v12  ;;  %v1709_v19 = vunpack.c.l.bf16 %v1764_v13  ;;  %v1710_v20 = vunpack.c.h.bf16 %v1764_v13  ;;  %v1766_v21 = vld [vmem:[%s2141_s7 + $0x20] sm:$0xff]   ;;  %v1767_v24 = vld [vmem:[%s2141_s7 + $0x28] sm:$0xff]   ;;  %v1768_v27 = vld [vmem:[%s2141_s7 + $0x30] sm:$0xff]  }
  0x5c   : > { %1841 = vset.pattern.permute.xlu2 %v903_v1  ;;  %s2162_s25 = sld [smem:[#allocation5 + %s619_s10]]  ;;  %s646_s5 = sadd.s32 5, %s2151_s22  ;;  %276 = vst [vmem:[#allocation2] sm:$0xff] %v1701_v14  ;;  %v1713_v22 = vunpack.c.l.bf16 %v1765_v18  ;;  %v1714_v23 = vunpack.c.h.bf16 %v1765_v18  ;;  %v1717_v25 = vunpack.c.l.bf16 %v1766_v21  ;;  %v1718_v26 = vunpack.c.h.bf16 %v1766_v21  ;;  %v1769_v30 = vld [vmem:[%s2141_s7 + $0x38] sm:$0xff]   ;;  %v1770_v33 = vld [vmem:[%s2141_s7 + $0x40] sm:$0xff]   ;;  %v1771_v36 = vld [vmem:[%s2141_s7 + $0x48] sm:$0xff]  }
  0x5d   : > { %s2169_s29 = sld [smem:[#allocation5 + %s628_s13]]  ;;  %s655_s15 = sadd.s32 6, %s2151_s22  ;;  %277 = vst [vmem:[#allocation2 + $0x8] sm:$0xff] %v1702_v15  ;;  %v1721_v28 = vunpack.c.l.bf16 %v1767_v24  ;;  %v1722_v29 = vunpack.c.h.bf16 %v1767_v24  ;;  %v1725_v31 = vunpack.c.l.bf16 %v1768_v27  ;;  %v1726_v32 = vunpack.c.h.bf16 %v1768_v27  ;;  %v1772_v39 = vld [vmem:[%s2141_s7 + $0x50] sm:$0xff]   ;;  %v1773_v42 = vld [vmem:[%s2141_s7 + $0x58] sm:$0xff]   ;;  %v1774_v45 = vld [vmem:[%s2141_s7 + $0x60] sm:$0xff]  }
  0x5e   : > { %s2172_s14 = sld [smem:[#allocation5 + %s637_s12]]  ;;  %s664_s11 = sadd.s32 7, %s2151_s22  ;;  %278 = vst [vmem:[#allocation2 + $0x10] sm:$0xff] %v1705_v16  ;;  %v1729_v34 = vunpack.c.l.bf16 %v1769_v30  ;;  %v1730_v35 = vunpack.c.h.bf16 %v1769_v30  ;;  %v1733_v37 = vunpack.c.l.bf16 %v1770_v33  ;;  %v1734_v38 = vunpack.c.h.bf16 %v1770_v33  ;;  %v1775_v48 = vld [vmem:[%s2141_s7 + $0x68] sm:$0xff]   ;;  %v1776_v51 = vld [vmem:[%s2141_s7 + $0x70] sm:$0xff]   ;;  %v1777_v54 = vld [vmem:[%s2141_s7 + $0x78] sm:$0xff]  }
  0x5f   : > { %p603_p6 = scmp.gt.s32.totalorder %s2155_s26, 0  ;;  %p1388_p2 = scmp.lt.s32.totalorder %s2155_s26, 255  ;;  %279 = vst [vmem:[#allocation2 + $0x18] sm:$0xff] %v1706_v17  ;;  %v1737_v40 = vunpack.c.l.bf16 %v1771_v36  ;;  %v1738_v41 = vunpack.c.h.bf16 %v1771_v36  ;;  %v1741_v43 = vunpack.c.l.bf16 %v1772_v39  ;;  %v1742_v44 = vunpack.c.h.bf16 %v1772_v39 }
  0x60   : > { %p612_p12 = scmp.gt.s32.totalorder %s2157_s8, 0  ;;  %p1393_p9 = scmp.lt.s32.totalorder %s2157_s8, 255  ;;  %280 = vst [vmem:[#allocation2 + $0x20] sm:$0xff] %v1709_v19  ;;  %v1745_v46 = vunpack.c.l.bf16 %v1773_v42  ;;  %v1746_v47 = vunpack.c.h.bf16 %v1773_v42  ;;  %v1749_v49 = vunpack.c.l.bf16 %v1774_v45  ;;  %v1750_v50 = vunpack.c.h.bf16 %v1774_v45 }
  0x61   : > { %s2718_s26 = smov (!%p603_p6, %s2155_s26), 0  ;;  %s647_s23 = sld [smem:[#allocation5 + %s646_s5]]  ;;  %281 = vst [vmem:[#allocation2 + $0x28] sm:$0xff] %v1710_v20  ;;  %v1753_v52 = vunpack.c.l.bf16 %v1775_v48  ;;  %v1754_v53 = vunpack.c.h.bf16 %v1775_v48  ;;  %v1757_v55 = vunpack.c.l.bf16 %v1776_v51  ;;  %v1758_v56 = vunpack.c.h.bf16 %v1776_v51 }
  0x62   : > { %s2720_s8 = smov (!%p612_p12, %s2157_s8), 0  ;;  %p621_p1 = scmp.gt.s32.totalorder %s2162_s25, 0  ;;  %282 = vst [vmem:[#allocation2 + $0x30] sm:$0xff] %v1713_v22  ;;  %v1761_v57 = vunpack.c.l.bf16 %v1777_v54  ;;  %v1762_v58 = vunpack.c.h.bf16 %v1777_v54  ;;  %vm1025_vm2 = vcmask 1043459   ;;  %vm1027_vm3 = vcmask 1044484  }
  0x63   : > { %920 = vperm.xlu1 %1840, %v915_v3   ;;  %906 = vperm.xlu0 %1839, %v901_v4   ;;  %s2722_s26 = smov (!%p1388_p2, %s2718_s26), 255  ;;  %s2724_s8 = smov (!%p1393_p9, %s2720_s8), 255  ;;  %283 = vst [vmem:[#allocation2 + $0x38] sm:$0xff] %v1714_v23  ;;  %vm1029_vm4 = vcmask 1045509   ;;  %vm1031_vm5 = vcmask 1046534   ;;  %vm1033_vm6 = vcmask 1047559  }
  0x64   : > { %934 = vperm.xlu2 %1841, %v929_v5   ;;  %p1398_p3 = scmp.lt.s32.totalorder %s2162_s25, 255  ;;  %s2726_s25 = smov (!%p621_p1, %s2162_s25), 0  ;;  %284 = vst [vmem:[#allocation2 + $0x40] sm:$0xff] %v1717_v25 }
  0x65   : > { %p630_p13 = scmp.gt.s32.totalorder %s2169_s29, 0  ;;  %s473_s22 = sadd.s32 2, %s2166_s30  ;;  %285 = vst [vmem:[#allocation2 + $0x48] sm:$0xff] %v1718_v26 }
  0x66   : > { %p639_p0 = scmp.gt.s32.totalorder %s2172_s14, 0  ;;  %p1403_p4 = scmp.lt.s32.totalorder %s2169_s29, 255  ;;  %286 = vst [vmem:[#allocation2 + $0x50] sm:$0xff] %v1721_v28 }
  0x67   : > { %s2728_s25 = smov (!%p1398_p3, %s2726_s25), 255  ;;  %s2730_s29 = smov (!%p630_p13, %s2169_s29), 0  ;;  %287 = vst [vmem:[#allocation2 + $0x58] sm:$0xff] %v1722_v29 }
  0x68   : > { %s640_s12 = scalar_select %p639_p0, %s2172_s14, 0  ;;  %288 = vst [vmem:[#allocation2 + $0x60] sm:$0xff] %v1725_v31 }
  0x69   : > { %s656_s9 = sld [smem:[#allocation5 + %s655_s15]]  ;;  %p648_p5 = scmp.gt.s32.totalorder %s647_s23, 0  ;;  %289 = vst [vmem:[#allocation2 + $0x68] sm:$0xff] %v1726_v32 }
  0x6a   : > { %p1408_p7 = scmp.lt.s32.totalorder %s2172_s14, 255  ;;  %s665_s5 = sld [smem:[#allocation5 + %s664_s11]]  ;;  %290 = vst [vmem:[#allocation2 + $0x70] sm:$0xff] %v1729_v34 }
  0x6b   : > { %927 = vperm.xlu1 %1840, %v922_v6   ;;  %913 = vperm.xlu0 %1839, %v908_v7   ;;  %s2732_s29 = smov (!%p1403_p4, %s2730_s29), 255  ;;  %p1413_p8 = scmp.lt.s32.totalorder %s647_s23, 255  ;;  %291 = vst [vmem:[#allocation2 + $0x78] sm:$0xff] %v1730_v35 }
  0x6c   : > { %941 = vperm.xlu2 %1841, %v936_v8   ;;  %s2734_s23 = smov (!%p648_p5, %s647_s23), 0  ;;  %s2736_s12 = smov (!%p1408_p7, %s640_s12), 255  ;;  %292 = vst [vmem:[#allocation2 + $0x80] sm:$0xff] %v1733_v37 }
  0x6d   : > { %s456_s13 = sld [smem:[#allocation5 + %s2166_s30]]  ;;  %s2738_s23 = smov (!%p1413_p8, %s2734_s23), 255  ;;  %293 = vst [vmem:[#allocation2 + $0x88] sm:$0xff] %v1734_v38 }
  0x6e   : > { %s2686_s15 = sadd.s32 1, %s2166_s30  ;;  %s474_s14 = sld [smem:[#allocation5 + %s473_s22]]  ;;  %294 = vst [vmem:[#allocation2 + $0x90] sm:$0xff] %v1737_v40 }
  0x6f   : > { %p657_p6 = scmp.gt.s32.totalorder %s656_s9, 0  ;;  %p1418_p2 = scmp.lt.s32.totalorder %s656_s9, 255  ;;  %295 = vst [vmem:[#allocation2 + $0x98] sm:$0xff] %v1738_v41 }
  0x70   : > { %p666_p12 = scmp.gt.s32.totalorder %s665_s5, 0  ;;  %s465_s4 = sld [smem:[#allocation5 + %s2686_s15]]  ;;  %296 = vst [vmem:[#allocation2 + $0xa0] sm:$0xff] %v1741_v43 }
  0x71   : > { %s2740_s9 = smov (!%p657_p6, %s656_s9), 0  ;;  %p1423_p9 = scmp.lt.s32.totalorder %s665_s5, 255  ;;  %297 = vst [vmem:[#allocation2 + $0xa8] sm:$0xff] %v1742_v44 }
  0x72   : > { %s2742_s5 = smov (!%p666_p12, %s665_s5), 0  ;;  %s509_s11 = sadd.s32 6, %s2166_s30  ;;  %298 = vst [vmem:[#allocation2 + $0xb0] sm:$0xff] %v1745_v46 }
  0x73   : > { %955 = vperm.xlu1 %1840, %v950_v9   ;;  %948 = vperm.xlu0 %1839, %v943_v10   ;;  %s518_s10 = sadd.s32 7, %s2166_s30  ;;  %p457_p1 = scmp.gt.s32.totalorder %s456_s13, 0  ;;  %299 = vst [vmem:[#allocation2 + $0xb8] sm:$0xff] %v1746_v47 }
  0x74   : > { %s2744_s9 = smov (!%p1418_p2, %s2740_s9), 255  ;;  %s2746_s5 = smov (!%p1423_p9, %s2742_s5), 255  ;;  %300 = vst [vmem:[#allocation2 + $0xc0] sm:$0xff] %v1749_v49 }
  0x75   : > { %s458_s2 = scalar_select %p457_p1, %s456_s13, 0  ;;  %301 = vst [vmem:[#allocation2 + $0xc8] sm:$0xff] %v1750_v50 }
  0x76   : > { %p466_p3 = scmp.gt.s32.totalorder %s465_s4, 0  ;;  %p1306_p13 = scmp.lt.s32.totalorder %s456_s13, 255  ;;  %302 = vst [vmem:[#allocation2 + $0xd0] sm:$0xff] %v1753_v52 }
  0x77   : > { %p475_p0 = scmp.gt.s32.totalorder %s474_s14, 0  ;;  %s2687_s24 = sadd.s32 3, %s2166_s30  ;;  %303 = vst [vmem:[#allocation2 + $0xd8] sm:$0xff] %v1754_v53 }
  0x78   : > { %s2219_s18 = sld [smem:[#allocation5 + %s2687_s24]]  ;;  %p1311_p4 = scmp.lt.s32.totalorder %s465_s4, 255  ;;  %304 = vst [vmem:[#allocation2 + $0xe0] sm:$0xff] %v1757_v55 }
  0x79   : > { %s467_s22 = scalar_select %p466_p3, %s465_s4, 0  ;;  %305 = vst [vmem:[#allocation2 + $0xe8] sm:$0xff] %v1758_v56 }
  0x7a   : > { %s2688_s17 = sadd.s32 4, %s2166_s30  ;;  %s2748_s2 = smov (!%p1306_p13, %s458_s2), 255  ;;  %306 = vst [vmem:[#allocation2 + $0xf0] sm:$0xff] %v1761_v57 }
  0x7b   : > { %s2223_s21 = sld [smem:[#allocation5 + %s2688_s17]]  ;;  %p1316_p5 = scmp.lt.s32.totalorder %s474_s14, 255  ;;  %307 = vst [vmem:[#allocation2 + $0xf8] sm:$0xff] %v1762_v58 }
  0x7c   : > { %s476_s13 = scalar_select %p475_p0, %s474_s14, 0 }
  0x7d   : > { %s2750_s22 = smov (!%p1311_p4, %s467_s22), 255  ;;  %s2689_s15 = sadd.s32 5, %s2166_s30 }
  0x7e   : > { %s2232_s1 = sld [smem:[#allocation5 + %s2689_s15]]  ;;  %p484_p7 = scmp.gt.s32.totalorder %s2219_s18, 0 }
  0x7f   : > { %s2752_s13 = smov (!%p1316_p5, %s476_s13), 255  ;;  %s2238_s17 = sld [smem:[#allocation5 + %s509_s11]] }
  0x80   : > { %s2240_s4 = sld [smem:[#allocation5 + %s518_s10]]  ;;  %p1321_p6 = scmp.lt.s32.totalorder %s2219_s18, 255 }
  0x81   : > { %p493_p8 = scmp.gt.s32.totalorder %s2223_s21, 0  ;;  %p1326_p12 = scmp.lt.s32.totalorder %s2223_s21, 255 }
  0x82   : > { %s485_s28 = scalar_select %p484_p7, %s2219_s18, 0 }
  0x83   : > { %s494_s30 = scalar_select %p493_p8, %s2223_s21, 0 }
  0x84   : > { %p502_p2 = scmp.gt.s32.totalorder %s2232_s1, 0  ;;  %s2754_s28 = smov (!%p1321_p6, %s485_s28), 255 }
  0x85   : > { %s2756_s30 = smov (!%p1326_p12, %s494_s30), 255  ;;  %p1331_p9 = scmp.lt.s32.totalorder %s2232_s1, 255 }
  0x86   : > { %s503_s11 = scalar_select %p502_p2, %s2232_s1, 0 }
  0x87   : > { %s2268_s18 = sld [smem:[#allocation5 + %s2148_s20]]  ;;  %p511_p1 = scmp.gt.s32.totalorder %s2238_s17, 0 }
  0x88   : > { %p520_p3 = scmp.gt.s32.totalorder %s2240_s4, 0  ;;  %p1336_p13 = scmp.lt.s32.totalorder %s2238_s17, 255 }
  0x89   : > { %s2758_s11 = smov (!%p1331_p9, %s503_s11), 255  ;;  %s2690_s21 = sadd.s32 1, %s2148_s20 }
  0x8a   : > { %s512_s14 = scalar_select %p511_p1, %s2238_s17, 0 }
  0x8b   : > { %s521_s15 = scalar_select %p520_p3, %s2240_s4, 0 }
  0x8c   : > { %s2290_s1 = sld [smem:[#allocation5 + %s2690_s21]]  ;;  %s2293_s10 = sadd.s32 640, %s2148_s20 }
  0x8d   : > { %p311_p0 = scmp.gt.s32.totalorder %s2268_s18, 0  ;;  %p1341_p4 = scmp.lt.s32.totalorder %s2240_s4, 255 }
  0x8e   : > { %s2691_s24 = sadd.s32 2, %s2148_s20  ;;  %s2760_s14 = smov (!%p1336_p13, %s512_s14), 255 }
  0x8f   : > { %s2300_s16 = sld [smem:[#allocation5 + %s2691_s24]]  ;;  %p1224_p5 = scmp.lt.s32.totalorder %s2268_s18, 255 }
  0x90   : > { %s312_s24 = scalar_select %p311_p0, %s2268_s18, 0 }
  0x91   : > { %s2762_s15 = smov (!%p1341_p4, %s521_s15), 255  ;;  %s2692_s17 = sadd.s32 3, %s2148_s20 }
  0x92   : > { %s2319_s21 = sld [smem:[#allocation5 + %s2692_s17]]  ;;  %p320_p7 = scmp.gt.s32.totalorder %s2290_s1, 0 }
  0x93   : > { %s2764_s24 = smov (!%p1224_p5, %s312_s24), 255  ;;  %s2693_s4 = sadd.s32 4, %s2148_s20 }
  0x94   : > { %s2330_s17 = sld [smem:[#allocation5 + %s2693_s4]]  ;;  %s2694_s19 = sadd.s32 5, %s2148_s20 }
  0x95   : > { %p329_p8 = scmp.gt.s32.totalorder %s2300_s16, 0  ;;  %s2335_s27 = sld [smem:[#allocation5 + %s2694_s19]] }
  0x96   : > { %s321_s18 = scalar_select %p320_p7, %s2290_s1, 0 }
  0x97   : > { %p1229_p6 = scmp.lt.s32.totalorder %s2290_s1, 255  ;;  %p1234_p12 = scmp.lt.s32.totalorder %s2300_s16, 255 }
  0x98   : > { %s330_s4 = scalar_select %p329_p8, %s2300_s16, 0 }
  0x99   : > { %p338_p2 = scmp.gt.s32.totalorder %s2319_s21, 0  ;;  %s2695_s7 = sadd.s32 6, %s2148_s20 }
  0x9a   : > { %s2350_s3 = sld [smem:[#allocation5 + %s2695_s7]]  ;;  %s2766_s18 = smov (!%p1229_p6, %s321_s18), 255 }
  0x9b   : > { %2696 = sst [smem:[#allocation26_spill]] %s2766_s18  ;;  %s2768_s4 = smov (!%p1234_p12, %s330_s4), 255 }
  0x9c   : > { %2697 = sst [smem:[#allocation27_spill]] %s2768_s4  ;;  %p1239_p9 = scmp.lt.s32.totalorder %s2319_s21, 255 }
  0x9d   : > { %s339_s19 = scalar_select %p338_p2, %s2319_s21, 0 }
  0x9e   : > { %p347_p1 = scmp.gt.s32.totalorder %s2330_s17, 0  ;;  %p356_p3 = scmp.gt.s32.totalorder %s2335_s27, 0 }
  0x9f   : > { %p1244_p13 = scmp.lt.s32.totalorder %s2330_s17, 255  ;;  %s2770_s19 = smov (!%p1239_p9, %s339_s19), 255 }
  0xa0   : > { %s348_s16 = scalar_select %p347_p1, %s2330_s17, 0 }
  0xa1   : > { %s357_s0 = scalar_select %p356_p3, %s2335_s27, 0 }
  0xa2   : > { %p365_p0 = scmp.gt.s32.totalorder %s2350_s3, 0  ;;  %s2698_s4 = sadd.s32 7, %s2148_s20 }
  0xa3   : > { %s2375_s18 = sld [smem:[#allocation5 + %s2698_s4]]  ;;  %s607_s21 = scalar_lea.vmem [#allocation2], %s2722_s26 }
  0xa4   : > { %v608_v59 = vld [vmem:[%s607_s21] sm:$0x1]  ;;  %s616_s1 = scalar_lea.vmem [#allocation2], %s2724_s8  ;;  %s625_s6 = scalar_lea.vmem [#allocation2], %s2728_s25 }
  0xa5   : > { %v617_v60 = vld [vmem:[%s616_s1] sm:$0x1]  ;;  %609 = vst [vmem:[#allocation3 + $0x20] sm:$0x1] %v608_v59  ;;  %s634_s7 = scalar_lea.vmem [#allocation2], %s2732_s29  ;;  %p1249_p4 = scmp.lt.s32.totalorder %s2335_s27, 255 }
  0xa6   : > { %v626_v61 = vld [vmem:[%s625_s6] sm:$0x1]  ;;  %618 = vst [vmem:[#allocation3 + $0x21] sm:$0x1] %v617_v60  ;;  %s643_s4 = scalar_lea.vmem [#allocation2], %s2736_s12  ;;  %s2772_s16 = smov (!%p1244_p13, %s348_s16), 255 }
  0xa7   : > { %v635_v62 = vld [vmem:[%s634_s7] sm:$0x1]  ;;  %627 = vst [vmem:[#allocation3 + $0x22] sm:$0x1] %v626_v61  ;;  %s652_s26 = scalar_lea.vmem [#allocation2], %s2738_s23  ;;  %s661_s8 = scalar_lea.vmem [#allocation2], %s2744_s9 }
  0xa8   : > { %v644_v63 = vld [vmem:[%s643_s4] sm:$0x1]  ;;  %s366_s6 = scalar_select %p365_p0, %s2350_s3, 0  ;;  %636 = vst [vmem:[#allocation3 + $0x23] sm:$0x1] %v635_v62 }
  0xa9   : > { %v653_v0 = vld [vmem:[%s652_s26] sm:$0x1]  ;;  %p1254_p5 = scmp.lt.s32.totalorder %s2350_s3, 255  ;;  %s2394_s25 = sld [smem:[#allocation5 + %s2293_s10]]  ;;  %645 = vst [vmem:[#allocation3 + $0x24] sm:$0x1] %v644_v63 }
  0xaa   : > { %v662_v1 = vld [vmem:[%s661_s8] sm:$0x1]  ;;  %s670_s29 = scalar_lea.vmem [#allocation2], %s2746_s5  ;;  %s2774_s0 = smov (!%p1249_p4, %s357_s0), 255  ;;  %654 = vst [vmem:[#allocation3 + $0x25] sm:$0x1] %v653_v0 }
  0xab   : > { %v671_v2 = vld [vmem:[%s670_s29] sm:$0x1]  ;;  %s461_s23 = scalar_lea.vmem [#allocation2], %s2748_s2  ;;  %663 = vst [vmem:[#allocation3 + $0x26] sm:$0x1] %v662_v1  ;;  %s470_s9 = scalar_lea.vmem [#allocation2], %s2750_s22 }
  0xac   : > { %v462_v3 = vld [vmem:[%s461_s23] sm:$0x1]  ;;  %p374_p7 = scmp.gt.s32.totalorder %s2375_s18, 0  ;;  %s2699_s12 = sadd.s32 1, %s2293_s10  ;;  %672 = vst [vmem:[#allocation3 + $0x27] sm:$0x1] %v671_v2 }
  0xad   : > { %v471_v4 = vld [vmem:[%s470_s9] sm:$0x1]  ;;  %s2406_s17 = sld [smem:[#allocation5 + %s2699_s12]]  ;;  %s479_s27 = scalar_lea.vmem [#allocation2], %s2752_s13  ;;  %463 = vst [vmem:[#allocation3 + $0x10] sm:$0x1] %v462_v3 }
  0xae   : > { %v480_v5 = vld [vmem:[%s479_s27] sm:$0x1]  ;;  %s2776_s6 = smov (!%p1254_p5, %s366_s6), 255  ;;  %s488_s2 = scalar_lea.vmem [#allocation2], %s2754_s28  ;;  %472 = vst [vmem:[#allocation3 + $0x11] sm:$0x1] %v471_v4 }
  0xaf   : > { %v489_v6 = vld [vmem:[%s488_s2] sm:$0x1]  ;;  %p1259_p8 = scmp.lt.s32.totalorder %s2375_s18, 255  ;;  %s497_s5 = scalar_lea.vmem [#allocation2], %s2756_s30  ;;  %481 = vst [vmem:[#allocation3 + $0x12] sm:$0x1] %v480_v5 }
  0xb0   : > { %v498_v7 = vld [vmem:[%s497_s5] sm:$0x1]  ;;  %s719_s22 = sadd.s32 5, %s2293_s10  ;;  %s728_s7 = sadd.s32 6, %s2293_s10  ;;  %490 = vst [vmem:[#allocation3 + $0x13] sm:$0x1] %v489_v6 }
  0xb1   : > { %s506_s3 = scalar_lea.vmem [#allocation2], %s2758_s11  ;;  %s2700_s13 = sld [smem:[#allocation26_spill]]  ;;  %499 = vst [vmem:[#allocation3 + $0x14] sm:$0x1] %v498_v7 }
  0xb2   : > { %v507_v8 = vld [vmem:[%s506_s3] sm:$0x1]  ;;  %s375_s1 = scalar_select %p374_p7, %s2375_s18, 0 }
  0xb3   : > { %s515_s28 = scalar_lea.vmem [#allocation2], %s2760_s14  ;;  %s2701_s21 = sld [smem:[#allocation27_spill]]  ;;  %508 = vst [vmem:[#allocation3 + $0x15] sm:$0x1] %v507_v8  ;;  %v896_v6 = vld [vmem:[#allocation3 + $0x20] sm:$0xff] }
  0xb4   : > { %v516_v9 = vld [vmem:[%s515_s28] sm:$0x1]  ;;  %p676_p6 = scmp.gt.s32.totalorder %s2394_s25, 0  ;;  %p1429_p12 = scmp.lt.s32.totalorder %s2394_s25, 255 }
  0xb5   : > { %s524_s30 = scalar_lea.vmem [#allocation2], %s2762_s15  ;;  %s2778_s1 = smov (!%p1259_p8, %s375_s1), 255  ;;  %517 = vst [vmem:[#allocation3 + $0x16] sm:$0x1] %v516_v9 }
  0xb6   : > { %v525_v10 = vld [vmem:[%s524_s30] sm:$0x1]  ;;  %s315_s11 = scalar_lea.vmem [#allocation2], %s2764_s24  ;;  %p685_p2 = scmp.gt.s32.totalorder %s2406_s17, 0 }
  0xb7   : > { %v316_v11 = vld [vmem:[%s315_s11] sm:$0x1]  ;;  %s677_s4 = scalar_select %p676_p6, %s2394_s25, 0  ;;  %526 = vst [vmem:[#allocation3 + $0x17] sm:$0x1] %v525_v10 }
  0xb8   : > { %s324_s14 = scalar_lea.vmem [#allocation2], %s2700_s13  ;;  %317 = vst [vmem:[#allocation3] sm:$0x1] %v316_v11  ;;  %s342_s18 = scalar_lea.vmem [#allocation2], %s2770_s19 }
  0xb9   : > { %v325_v12 = vld [vmem:[%s324_s14] sm:$0x1]  ;;  %s333_s15 = scalar_lea.vmem [#allocation2], %s2701_s21  ;;  %s2780_s4 = smov (!%p1429_p12, %s677_s4), 255 }
  0xba   : > { %v334_v13 = vld [vmem:[%s333_s15] sm:$0x1]  ;;  %s686_s24 = scalar_select %p685_p2, %s2406_s17, 0  ;;  %326 = vst [vmem:[#allocation3 + $0x1] sm:$0x1] %v325_v12 }
  0xbb   : > { %v343_v14 = vld [vmem:[%s342_s18] sm:$0x1]  ;;  %s351_s26 = scalar_lea.vmem [#allocation2], %s2772_s16  ;;  %p1434_p9 = scmp.lt.s32.totalorder %s2406_s17, 255  ;;  %335 = vst [vmem:[#allocation3 + $0x2] sm:$0x1] %v334_v13 }
  0xbc   : > { %v352_v15 = vld [vmem:[%s351_s26] sm:$0x1]  ;;  %s360_s8 = scalar_lea.vmem [#allocation2], %s2774_s0  ;;  %s2702_s29 = sadd.s32 2, %s2293_s10  ;;  %344 = vst [vmem:[#allocation3 + $0x3] sm:$0x1] %v343_v14 }
  0xbd   : > { %v361_v16 = vld [vmem:[%s360_s8] sm:$0x1]  ;;  %s2444_s23 = sld [smem:[#allocation5 + %s2702_s29]]  ;;  %s369_s25 = scalar_lea.vmem [#allocation2], %s2776_s6  ;;  %353 = vst [vmem:[#allocation3 + $0x4] sm:$0x1] %v352_v15 }
  0xbe   : > { %v370_v17 = vld [vmem:[%s369_s25] sm:$0x1]  ;;  %s2782_s24 = smov (!%p1434_p9, %s686_s24), 255  ;;  %s378_s19 = scalar_lea.vmem [#allocation2], %s2778_s1  ;;  %362 = vst [vmem:[#allocation3 + $0x5] sm:$0x1] %v361_v16  ;;  %v935_v60 = vpop.permute.xlu2 %934 }
  0xbf   : > { %v379_v18 = vld [vmem:[%s378_s19] sm:$0x1]  ;;  %s2703_s16 = sadd.s32 3, %s2293_s10  ;;  %s2451_s12 = sadd.s32 384, %s2148_s20  ;;  %371 = vst [vmem:[#allocation3 + $0x6] sm:$0x1] %v370_v17  ;;  %v961_v11 = vmul.f32 %v935_v60, %v896_v6 }
  0xc0   : > { %s702_s9 = sld [smem:[#allocation5 + %s2703_s16]]  ;;  %s680_s0 = scalar_lea.vmem [#allocation2], %s2780_s4  ;;  %380 = vst [vmem:[#allocation3 + $0x7] sm:$0x1] %v379_v18  ;;  %v894_v62 = vld [vmem:[#allocation3 + $0x10] sm:$0xff] }
  0xc1   : > { %v681_v19 = vld [vmem:[%s680_s0] sm:$0x1]  ;;  %s2704_s17 = sadd.s32 4, %s2293_s10  ;;  %s737_s27 = sadd.s32 7, %s2293_s10 }
  0xc2   : > { %s2455_s6 = sld [smem:[#allocation5 + %s2704_s17]]  ;;  %s689_s2 = scalar_lea.vmem [#allocation2], %s2782_s24  ;;  %682 = vst [vmem:[#allocation3 + $0x28] sm:$0x1] %v681_v19 }
  0xc3   : > { %v690_v20 = vld [vmem:[%s689_s2] sm:$0x1]  ;;  %s2460_s5 = sld [smem:[#allocation5 + %s719_s22]]  ;;  %s537_s13 = sadd.s32 1, %s2451_s12 }
  0xc4   : > { %s2464_s3 = sld [smem:[#allocation5 + %s728_s7]]  ;;  %p694_p1 = scmp.gt.s32.totalorder %s2444_s23, 0  ;;  %691 = vst [vmem:[#allocation3 + $0x29] sm:$0x1] %v690_v20 }
  0xc5   : > { %p1439_p3 = scmp.lt.s32.totalorder %s2444_s23, 255  ;;  %s2469_s1 = sld [smem:[#allocation5 + %s737_s27]] }
  0xc6   : > { %s546_s28 = sadd.s32 2, %s2451_s12  ;;  %s2784_s23 = smov (!%p694_p1, %s2444_s23), 0  ;;  %v942_v12 = vpop.permute.xlu2 %941 }
  0xc7   : > { %p703_p13 = scmp.gt.s32.totalorder %s702_s9, 0  ;;  %p1444_p0 = scmp.lt.s32.totalorder %s702_s9, 255  ;;  %v892_v58 = vld [vmem:[#allocation3] sm:$0xff] }
  0xc8   : > { %s2786_s23 = smov (!%p1439_p3, %s2784_s23), 255  ;;  %p712_p4 = scmp.gt.s32.totalorder %s2455_s6, 0 }
  0xc9   : > { %s2788_s9 = smov (!%p703_p13, %s702_s9), 0  ;;  %s698_s10 = scalar_lea.vmem [#allocation2], %s2786_s23 }
  0xca   : > { %v699_v21 = vld [vmem:[%s698_s10] sm:$0x1]  ;;  %s2790_s9 = smov (!%p1444_p0, %s2788_s9), 255  ;;  %p1449_p5 = scmp.lt.s32.totalorder %s2455_s6, 255 }
  0xcb   : > { %700 = vst [vmem:[#allocation3 + $0x2a] sm:$0x1] %v699_v21  ;;  %s713_s22 = scalar_select %p712_p4, %s2455_s6, 0 }
  0xcc   : > { %s707_s7 = scalar_lea.vmem [#allocation2], %s2790_s9  ;;  %p721_p7 = scmp.gt.s32.totalorder %s2460_s5, 0 }
  0xcd   : > { %v708_v22 = vld [vmem:[%s707_s7] sm:$0x1]  ;;  %p1454_p8 = scmp.lt.s32.totalorder %s2460_s5, 255  ;;  %s2792_s22 = smov (!%p1449_p5, %s713_s22), 255 }
  0xce   : > { %709 = vst [vmem:[#allocation3 + $0x2b] sm:$0x1] %v708_v22  ;;  %s2794_s5 = smov (!%p721_p7, %s2460_s5), 0  ;;  %p730_p6 = scmp.gt.s32.totalorder %s2464_s3, 0 }
  0xcf   : > { %s716_s21 = scalar_lea.vmem [#allocation2], %s2792_s22  ;;  %s2796_s5 = smov (!%p1454_p8, %s2794_s5), 255 }
  0xd0   : > { %v717_v23 = vld [vmem:[%s716_s21] sm:$0x1]  ;;  %s731_s30 = scalar_select %p730_p6, %s2464_s3, 0 }
  0xd1   : > { %718 = vst [vmem:[#allocation3 + $0x2c] sm:$0x1] %v717_v23  ;;  %p1459_p12 = scmp.lt.s32.totalorder %s2464_s3, 255  ;;  %s725_s11 = scalar_lea.vmem [#allocation2], %s2796_s5 }
  0xd2   : > { %v726_v24 = vld [vmem:[%s725_s11] sm:$0x1]  ;;  %p739_p2 = scmp.gt.s32.totalorder %s2469_s1, 0  ;;  %p1464_p9 = scmp.lt.s32.totalorder %s2469_s1, 255 }
  0xd3   : > { %727 = vst [vmem:[#allocation3 + $0x2d] sm:$0x1] %v726_v24  ;;  %s2798_s30 = smov (!%p1459_p12, %s731_s30), 255  ;;  %s555_s4 = sadd.s32 3, %s2451_s12  ;;  %v989_v24 = vrot.slane %v961_v11, 4 }
  0xd4   : > { %s2800_s1 = smov (!%p739_p2, %s2469_s1), 0  ;;  %s734_s14 = scalar_lea.vmem [#allocation2], %s2798_s30 }
  0xd5   : > { %v735_v25 = vld [vmem:[%s734_s14] sm:$0x1]  ;;  %s2802_s1 = smov (!%p1464_p9, %s2800_s1), 255  ;;  %s564_s15 = sadd.s32 4, %s2451_s12  ;;  %v907_v51 = vpop.permute.xlu0 %906  ;;  %v921_v53 = vpop.permute.xlu1 %920 }
  0xd6   : > { %736 = vst [vmem:[#allocation3 + $0x2e] sm:$0x1] %v735_v25  ;;  %s529_s18 = sld [smem:[#allocation5 + %s2451_s12]]  ;;  %s743_s26 = scalar_lea.vmem [#allocation2], %s2802_s1  ;;  %v957_v63 = vmul.f32 %v907_v51, %v892_v58  ;;  %v959_v2 = vmul.f32 %v921_v53, %v894_v62 }
  0xd7   : > { %s538_s24 = sld [smem:[#allocation5 + %s537_s13]]  ;;  %v744_v26 = vld [vmem:[%s743_s26] sm:$0x1]  ;;  %s573_s8 = sadd.s32 5, %s2451_s12 }
  0xd8   : > { %s547_s29 = sld [smem:[#allocation5 + %s546_s28]]  ;;  %745 = vst [vmem:[#allocation3 + $0x2f] sm:$0x1] %v744_v26  ;;  %s582_s23 = sadd.s32 6, %s2451_s12  ;;  %v965_v4 = vrot.slane %v957_v63, 4  ;;  %v977_v9 = vrot.slane %v959_v2, 4 }
  0xd9   : > { %s2494_s25 = sld [smem:[#allocation5 + %s555_s4]]  ;;  %s591_s19 = sadd.s32 7, %s2451_s12 }
  0xda   : > { %s2497_s16 = sld [smem:[#allocation5 + %s564_s15]]  ;;  %s2502_s0 = sadd.s32 128, %s2148_s20  ;;  %v966_v10 = vadd.f32 %v965_v4, %v957_v63  ;;  %v978_v19 = vadd.f32 %v977_v9, %v959_v2 }
  0xdb   : > { %s2499_s9 = sld [smem:[#allocation5 + %s573_s8]]  ;;  %s391_s28 = sadd.s32 1, %s2502_s0 }
  0xdc   : > { %p530_p1 = scmp.gt.s32.totalorder %s529_s18, 0  ;;  %p1347_p3 = scmp.lt.s32.totalorder %s529_s18, 255  ;;  %v967_v20 = vrot.slane %v966_v10, 2 }
  0xdd   : > { %p539_p13 = scmp.gt.s32.totalorder %s538_s24, 0  ;;  %p1352_p0 = scmp.lt.s32.totalorder %s538_s24, 255  ;;  %v914_v56 = vpop.permute.xlu0 %913  ;;  %v928_v61 = vpop.permute.xlu1 %927 }
  0xde   : > { %s2804_s18 = smov (!%p530_p1, %s529_s18), 0  ;;  %p548_p4 = scmp.gt.s32.totalorder %s547_s29, 0 }
  0xdf   : > { %s2806_s24 = smov (!%p539_p13, %s538_s24), 0  ;;  %s2808_s18 = smov (!%p1347_p3, %s2804_s18), 255  ;;  %v897_v13 = vld [vmem:[#allocation3 + $0x28] sm:$0xff] }
  0xe0   : > { %s2810_s24 = smov (!%p1352_p0, %s2806_s24), 255  ;;  %s534_s17 = scalar_lea.vmem [#allocation2], %s2808_s18  ;;  %v962_v21 = vmul.f32 %v942_v12, %v897_v13 }
  0xe1   : > { %v535_v27 = vld [vmem:[%s534_s17] sm:$0x1]  ;;  %p1357_p5 = scmp.lt.s32.totalorder %s547_s29, 255  ;;  %s543_s6 = scalar_lea.vmem [#allocation2], %s2810_s24 }
  0xe2   : > { %536 = vst [vmem:[#allocation3 + $0x18] sm:$0x1] %v535_v27  ;;  %v544_v28 = vld [vmem:[%s543_s6] sm:$0x1]  ;;  %s2812_s29 = smov (!%p548_p4, %s547_s29), 0  ;;  %p557_p7 = scmp.gt.s32.totalorder %s2494_s25, 0 }
  0xe3   : > { %545 = vst [vmem:[#allocation3 + $0x19] sm:$0x1] %v544_v28  ;;  %p1362_p8 = scmp.lt.s32.totalorder %s2494_s25, 255  ;;  %s2814_s29 = smov (!%p1357_p5, %s2812_s29), 255  ;;  %v979_v27 = vrot.slane %v978_v19, 2  ;;  %v968_v28 = vadd.f32 %v967_v20, %v966_v10 }
  0xe4   : > { %s2816_s25 = smov (!%p557_p7, %s2494_s25), 0  ;;  %p566_p6 = scmp.gt.s32.totalorder %s2497_s16, 0 }
  0xe5   : > { %s552_s27 = scalar_lea.vmem [#allocation2], %s2814_s29  ;;  %s2818_s25 = smov (!%p1362_p8, %s2816_s25), 255  ;;  %v956_v14 = vpop.permute.xlu1 %955 }
  0xe6   : > { %v553_v29 = vld [vmem:[%s552_s27] sm:$0x1]  ;;  %s567_s2 = scalar_select %p566_p6, %s2497_s16, 0 }
  0xe7   : > { %554 = vst [vmem:[#allocation3 + $0x1a] sm:$0x1] %v553_v29  ;;  %p1367_p12 = scmp.lt.s32.totalorder %s2497_s16, 255  ;;  %s561_s5 = scalar_lea.vmem [#allocation2], %s2818_s25  ;;  %v995_v29 = vrot.slane %v962_v21, 4 }
  0xe8   : > { %v562_v30 = vld [vmem:[%s561_s5] sm:$0x1]  ;;  %p575_p2 = scmp.gt.s32.totalorder %s2499_s9, 0  ;;  %p1372_p9 = scmp.lt.s32.totalorder %s2499_s9, 255 }
  0xe9   : > { %563 = vst [vmem:[#allocation3 + $0x1b] sm:$0x1] %v562_v30  ;;  %s2820_s2 = smov (!%p1367_p12, %s567_s2), 255  ;;  %s583_s3 = sld [smem:[#allocation5 + %s582_s23]] }
  0xea   : > { %s2822_s9 = smov (!%p575_p2, %s2499_s9), 0  ;;  %s570_s13 = scalar_lea.vmem [#allocation2], %s2820_s2 }
  0xeb   : > { %v571_v31 = vld [vmem:[%s570_s13] sm:$0x1]  ;;  %s2824_s9 = smov (!%p1372_p9, %s2822_s9), 255  ;;  %s592_s1 = sld [smem:[#allocation5 + %s591_s19]] }
  0xec   : > { %572 = vst [vmem:[#allocation3 + $0x1c] sm:$0x1] %v571_v31  ;;  %s579_s10 = scalar_lea.vmem [#allocation2], %s2824_s9  ;;  %s400_s22 = sadd.s32 2, %s2502_s0 }
  0xed   : > { %v580_v32 = vld [vmem:[%s579_s10] sm:$0x1]  ;;  %s409_s7 = sadd.s32 3, %s2502_s0  ;;  %s418_s21 = sadd.s32 4, %s2502_s0 }
  0xee   : > { %581 = vst [vmem:[#allocation3 + $0x1d] sm:$0x1] %v580_v32  ;;  %s383_s30 = sld [smem:[#allocation5 + %s2502_s0]]  ;;  %s427_s11 = sadd.s32 5, %s2502_s0  ;;  %v990_v32 = vadd.f32 %v989_v24, %v961_v11 }
  0xef   : > { %p584_p1 = scmp.gt.s32.totalorder %s583_s3, 0  ;;  %p1377_p3 = scmp.lt.s32.totalorder %s583_s3, 255 }
  0xf0   : > { %s392_s4 = sld [smem:[#allocation5 + %s391_s28]]  ;;  %s436_s26 = sadd.s32 6, %s2502_s0 }
  0xf1   : > { %s2826_s3 = smov (!%p584_p1, %s583_s3), 0  ;;  %p593_p13 = scmp.gt.s32.totalorder %s592_s1, 0 }
  0xf2   : > { %p1382_p0 = scmp.lt.s32.totalorder %s592_s1, 255  ;;  %s2828_s3 = smov (!%p1377_p3, %s2826_s3), 255 }
  0xf3   : > { %s2830_s1 = smov (!%p593_p13, %s592_s1), 0  ;;  %s588_s12 = scalar_lea.vmem [#allocation2], %s2828_s3 }
  0xf4   : > { %p384_p4 = scmp.gt.s32.totalorder %s383_s30, 0  ;;  %v589_v33 = vld [vmem:[%s588_s12] sm:$0x1]  ;;  %s2832_s1 = smov (!%p1382_p0, %s2830_s1), 255 }
  0xf5   : > { %590 = vst [vmem:[#allocation3 + $0x1e] sm:$0x1] %v589_v33  ;;  %p1265_p5 = scmp.lt.s32.totalorder %s383_s30, 255  ;;  %s597_s15 = scalar_lea.vmem [#allocation2], %s2832_s1 }
  0xf6   : > { %s385_s14 = scalar_select %p384_p4, %s383_s30, 0  ;;  %v598_v34 = vld [vmem:[%s597_s15] sm:$0x1] }
  0xf7   : > { %p393_p7 = scmp.gt.s32.totalorder %s392_s4, 0  ;;  %p1270_p8 = scmp.lt.s32.totalorder %s392_s4, 255  ;;  %599 = vst [vmem:[#allocation3 + $0x1f] sm:$0x1] %v598_v34 }
  0xf8   : > { %s2834_s14 = smov (!%p1265_p5, %s385_s14), 255  ;;  %s401_s18 = sld [smem:[#allocation5 + %s400_s22]] }
  0xf9   : > { %s2836_s4 = smov (!%p393_p7, %s392_s4), 0  ;;  %s388_s24 = scalar_lea.vmem [#allocation2], %s2834_s14 }
  0xfa   : > { %v389_v35 = vld [vmem:[%s388_s24] sm:$0x1]  ;;  %s2838_s4 = smov (!%p1270_p8, %s2836_s4), 255  ;;  %s410_s8 = sld [smem:[#allocation5 + %s409_s7]] }
  0xfb   : > { %390 = vst [vmem:[#allocation3 + $0x8] sm:$0x1] %v389_v35  ;;  %s419_s29 = sld [smem:[#allocation5 + %s418_s21]]  ;;  %s445_s23 = sadd.s32 7, %s2502_s0  ;;  %v980_v35 = vadd.f32 %v979_v27, %v978_v19 }
  0xfc   : > { %s397_s25 = scalar_lea.vmem [#allocation2], %s2838_s4  ;;  %s2531_s19 = sld [smem:[#allocation5 + %s427_s11]] }
  0xfd   : > { %v398_v36 = vld [vmem:[%s397_s25] sm:$0x1]  ;;  %s2533_s16 = sld [smem:[#allocation5 + %s436_s26]]  ;;  %s2538_s17 = sadd.s32 896, %s2148_s20 }
  0xfe   : > { %399 = vst [vmem:[#allocation3 + $0x9] sm:$0x1] %v398_v36  ;;  %p402_p6 = scmp.gt.s32.totalorder %s401_s18, 0  ;;  %p1275_p12 = scmp.lt.s32.totalorder %s401_s18, 255  ;;  %v895_v3 = vld [vmem:[#allocation3 + $0x18] sm:$0xff]  ;;  %v969_v36 = vrot.slane %v968_v28, 1 }
  0xff   : > { %s2535_s9 = sld [smem:[#allocation5 + %s445_s23]]  ;;  %s829_s13 = sadd.s32 1, %s2538_s17  ;;  %v960_v7 = vmul.f32 %v928_v61, %v895_v3 }
 0x100   : > { %s2840_s18 = smov (!%p402_p6, %s401_s18), 0  ;;  %p411_p2 = scmp.gt.s32.totalorder %s410_s8, 0 }
 0x101   : > { %p1280_p9 = scmp.lt.s32.totalorder %s410_s8, 255  ;;  %s2842_s18 = smov (!%p1275_p12, %s2840_s18), 255  ;;  %v983_v17 = vrot.slane %v960_v7, 4 }
 0x102   : > { %s2844_s8 = smov (!%p411_p2, %s410_s8), 0  ;;  %p420_p1 = scmp.gt.s32.totalorder %s419_s29, 0 }
 0x103   : > { %s406_s0 = scalar_lea.vmem [#allocation2], %s2842_s18  ;;  %s2846_s8 = smov (!%p1280_p9, %s2844_s8), 255  ;;  %v984_v25 = vadd.f32 %v983_v17, %v960_v7 }
 0x104   : > { %v407_v37 = vld [vmem:[%s406_s0] sm:$0x1]  ;;  %s421_s6 = scalar_select %p420_p1, %s419_s29, 0 }
 0x105   : > { %408 = vst [vmem:[#allocation3 + $0xa] sm:$0x1] %v407_v37  ;;  %p1285_p3 = scmp.lt.s32.totalorder %s419_s29, 255  ;;  %s415_s27 = scalar_lea.vmem [#allocation2], %s2846_s8  ;;  %v985_v33 = vrot.slane %v984_v25, 2  ;;  %v996_v37 = vadd.f32 %v995_v29, %v962_v21 }
 0x106   : > { %v416_v38 = vld [vmem:[%s415_s27] sm:$0x1]  ;;  %p429_p13 = scmp.gt.s32.totalorder %s2531_s19, 0  ;;  %p1290_p0 = scmp.lt.s32.totalorder %s2531_s19, 255 }
 0x107   : > { %417 = vst [vmem:[#allocation3 + $0xb] sm:$0x1] %v416_v38  ;;  %s2848_s6 = smov (!%p1285_p3, %s421_s6), 255  ;;  %p438_p4 = scmp.gt.s32.totalorder %s2533_s16, 0 }
 0x108   : > { %s2850_s19 = smov (!%p429_p13, %s2531_s19), 0  ;;  %s424_s2 = scalar_lea.vmem [#allocation2], %s2848_s6 }
 0x109   : > { %v425_v39 = vld [vmem:[%s424_s2] sm:$0x1]  ;;  %s2852_s19 = smov (!%p1290_p0, %s2850_s19), 255  ;;  %p1295_p5 = scmp.lt.s32.totalorder %s2533_s16, 255 }
 0x10a   : > { %426 = vst [vmem:[#allocation3 + $0xc] sm:$0x1] %v425_v39  ;;  %s439_s5 = scalar_select %p438_p4, %s2533_s16, 0  ;;  %v991_v39 = vrot.slane %v990_v32, 2 }
 0x10b   : > { %s433_s3 = scalar_lea.vmem [#allocation2], %s2852_s19  ;;  %p447_p7 = scmp.gt.s32.totalorder %s2535_s9, 0 }
 0x10c   : > { %v434_v40 = vld [vmem:[%s433_s3] sm:$0x1]  ;;  %p1300_p8 = scmp.lt.s32.totalorder %s2535_s9, 255  ;;  %s2854_s5 = smov (!%p1295_p5, %s439_s5), 255 }
 0x10d   : > { %435 = vst [vmem:[#allocation3 + $0xd] sm:$0x1] %v434_v40  ;;  %s2856_s9 = smov (!%p447_p7, %s2535_s9), 0  ;;  %s442_s1 = scalar_lea.vmem [#allocation2], %s2854_s5  ;;  %v986_v40 = vadd.f32 %v985_v33, %v984_v25 }
 0x10e   : > { %v443_v41 = vld [vmem:[%s442_s1] sm:$0x1]  ;;  %s2858_s9 = smov (!%p1300_p8, %s2856_s9), 255  ;;  %s838_s28 = sadd.s32 2, %s2538_s17 }
 0x10f   : > { %444 = vst [vmem:[#allocation3 + $0xe] sm:$0x1] %v443_v41  ;;  %s847_s10 = sadd.s32 3, %s2538_s17  ;;  %s821_s22 = sld [smem:[#allocation5 + %s2538_s17]] }
 0x110   : > { %s451_s7 = scalar_lea.vmem [#allocation2], %s2858_s9  ;;  %s856_s21 = sadd.s32 4, %s2538_s17 }
 0x111   : > { %v452_v42 = vld [vmem:[%s451_s7] sm:$0x1]  ;;  %s830_s30 = sld [smem:[#allocation5 + %s829_s13]]  ;;  %s865_s11 = sadd.s32 5, %s2538_s17 }
 0x112   : > { %453 = vst [vmem:[#allocation3 + $0xf] sm:$0x1] %v452_v42  ;;  %s839_s4 = sld [smem:[#allocation5 + %s838_s28]]  ;;  %s874_s12 = sadd.s32 6, %s2538_s17  ;;  %v949_v42 = vpop.permute.xlu0 %948 }
 0x113   : > { %s2556_s14 = sld [smem:[#allocation5 + %s847_s10]]  ;;  %s883_s15 = sadd.s32 7, %s2538_s17 }
 0x114   : > { %s2559_s18 = sld [smem:[#allocation5 + %s856_s21]]  ;;  %s2564_s26 = sadd.s32 768, %s2148_s20 }
 0x115   : > { %s2561_s24 = sld [smem:[#allocation5 + %s865_s11]]  ;;  %p822_p6 = scmp.gt.s32.totalorder %s821_s22, 0 }
 0x116   : > { %p1511_p12 = scmp.lt.s32.totalorder %s821_s22, 255  ;;  %s875_s19 = sld [smem:[#allocation5 + %s874_s12]] }
 0x117   : > { %p831_p2 = scmp.gt.s32.totalorder %s830_s30, 0  ;;  %p1516_p9 = scmp.lt.s32.totalorder %s830_s30, 255 }
 0x118   : > { %s2860_s22 = smov (!%p822_p6, %s821_s22), 0  ;;  %p840_p1 = scmp.gt.s32.totalorder %s839_s4, 0 }
 0x119   : > { %s2862_s30 = smov (!%p831_p2, %s830_s30), 0  ;;  %s2864_s22 = smov (!%p1511_p12, %s2860_s22), 255  ;;  %v893_v57 = vld [vmem:[#allocation3 + $0x8] sm:$0xff] }
 0x11a   : > { %s2866_s30 = smov (!%p1516_p9, %s2862_s30), 255  ;;  %s826_s8 = scalar_lea.vmem [#allocation2], %s2864_s22  ;;  %v958_v59 = vmul.f32 %v914_v56, %v893_v57 }
 0x11b   : > { %v827_v43 = vld [vmem:[%s826_s8] sm:$0x1]  ;;  %p1521_p3 = scmp.lt.s32.totalorder %s839_s4, 255  ;;  %s835_s20 = scalar_lea.vmem [#allocation2], %s2866_s30 }
 0x11c   : > { %828 = vst [vmem:[#allocation3 + $0x38] sm:$0x1] %v827_v43  ;;  %v836_v44 = vld [vmem:[%s835_s20] sm:$0x1]  ;;  %s2868_s4 = smov (!%p840_p1, %s839_s4), 0  ;;  %p849_p13 = scmp.gt.s32.totalorder %s2556_s14, 0 }
 0x11d   : > { %837 = vst [vmem:[#allocation3 + $0x39] sm:$0x1] %v836_v44  ;;  %p1526_p0 = scmp.lt.s32.totalorder %s2556_s14, 255  ;;  %s2870_s4 = smov (!%p1521_p3, %s2868_s4), 255  ;;  %v971_v0 = vrot.slane %v958_v59, 4  ;;  %v981_v43 = vrot.slane %v980_v35, 1  ;;  %v970_v44 = vadd.f32 %v969_v36, %v968_v28 }
 0x11e   : > { %s2872_s14 = smov (!%p849_p13, %s2556_s14), 0  ;;  %p858_p4 = scmp.gt.s32.totalorder %s2559_s18, 0 }
 0x11f   : > { %s844_s29 = scalar_lea.vmem [#allocation2], %s2870_s4  ;;  %s2874_s14 = smov (!%p1526_p0, %s2872_s14), 255  ;;  %v972_v8 = vadd.f32 %v971_v0, %v958_v59 }
 0x120   : > { %v845_v45 = vld [vmem:[%s844_s29] sm:$0x1]  ;;  %s859_s23 = scalar_select %p858_p4, %s2559_s18, 0 }
 0x121   : > { %846 = vst [vmem:[#allocation3 + $0x3a] sm:$0x1] %v845_v45  ;;  %p1531_p5 = scmp.lt.s32.totalorder %s2559_s18, 255  ;;  %s853_s25 = scalar_lea.vmem [#allocation2], %s2874_s14  ;;  %v973_v18 = vrot.slane %v972_v8, 2  ;;  %v997_v45 = vrot.slane %v996_v37, 2 }
 0x122   : > { %v854_v46 = vld [vmem:[%s853_s25] sm:$0x1]  ;;  %p867_p7 = scmp.gt.s32.totalorder %s2561_s24, 0  ;;  %p1536_p8 = scmp.lt.s32.totalorder %s2561_s24, 255 }
 0x123   : > { %855 = vst [vmem:[#allocation3 + $0x3b] sm:$0x1] %v854_v46  ;;  %s2876_s23 = smov (!%p1531_p5, %s859_s23), 255  ;;  %s884_s9 = sld [smem:[#allocation5 + %s883_s15]]  ;;  %v974_v26 = vadd.f32 %v973_v18, %v972_v8 }
 0x124   : > { %s2878_s24 = smov (!%p867_p7, %s2561_s24), 0  ;;  %s862_s16 = scalar_lea.vmem [#allocation2], %s2876_s23 }
 0x125   : > { %v863_v47 = vld [vmem:[%s862_s16] sm:$0x1]  ;;  %s2880_s24 = smov (!%p1536_p8, %s2878_s24), 255  ;;  %s756_s0 = sadd.s32 1, %s2564_s26  ;;  %v975_v34 = vrot.slane %v974_v26, 1 }
 0x126   : > { %864 = vst [vmem:[#allocation3 + $0x3c] sm:$0x1] %v863_v47  ;;  %s871_s6 = scalar_lea.vmem [#allocation2], %s2880_s24  ;;  %s765_s27 = sadd.s32 2, %s2564_s26 }
 0x127   : > { %v872_v48 = vld [vmem:[%s871_s6] sm:$0x1]  ;;  %s748_s2 = sld [smem:[#allocation5 + %s2564_s26]]  ;;  %s774_s5 = sadd.s32 3, %s2564_s26  ;;  %v976_v41 = vadd.f32 %v975_v34, %v974_v26 }
 0x128   : > { %873 = vst [vmem:[#allocation3 + $0x3d] sm:$0x1] %v872_v48  ;;  %s757_s3 = sld [smem:[#allocation5 + %s756_s0]]  ;;  %p876_p6 = scmp.gt.s32.totalorder %s875_s19, 0  ;;  %v992_v48 = vadd.f32 %v991_v39, %v990_v32 }
 0x129   : > { %p1541_p12 = scmp.lt.s32.totalorder %s875_s19, 255  ;;  %s783_s13 = sadd.s32 4, %s2564_s26  ;;  %v1022_v51 = vsel %vm1021_vm0, %v976_v41, %v970_v44 }
 0x12a   : > { %s2584_s1 = sld [smem:[#allocation5 + %s765_s27]]  ;;  %s2882_s19 = smov (!%p876_p6, %s875_s19), 0  ;;  %v993_v56 = vrot.slane %v992_v48, 1 }
 0x12b   : > { %p885_p2 = scmp.gt.s32.totalorder %s884_s9, 0  ;;  %p1546_p9 = scmp.lt.s32.totalorder %s884_s9, 255 }
 0x12c   : > { %s2884_s19 = smov (!%p1541_p12, %s2882_s19), 255  ;;  %s792_s21 = sadd.s32 5, %s2564_s26  ;;  %v994_v0 = vadd.f32 %v993_v56, %v992_v48 }
 0x12d   : > { %s2886_s9 = smov (!%p885_p2, %s884_s9), 0  ;;  %p749_p1 = scmp.gt.s32.totalorder %s748_s2, 0 }
 0x12e   : > { %s880_s17 = scalar_lea.vmem [#allocation2], %s2884_s19  ;;  %s2888_s9 = smov (!%p1546_p9, %s2886_s9), 255 }
 0x12f   : > { %v881_v49 = vld [vmem:[%s880_s17] sm:$0x1]  ;;  %s750_s28 = scalar_select %p749_p1, %s748_s2, 0 }
 0x130   : > { %882 = vst [vmem:[#allocation3 + $0x3e] sm:$0x1] %v881_v49  ;;  %p1470_p3 = scmp.lt.s32.totalorder %s748_s2, 255  ;;  %s889_s10 = scalar_lea.vmem [#allocation2], %s2888_s9 }
 0x131   : > { %v890_v50 = vld [vmem:[%s889_s10] sm:$0x1]  ;;  %p758_p13 = scmp.gt.s32.totalorder %s757_s3, 0  ;;  %p1475_p0 = scmp.lt.s32.totalorder %s757_s3, 255 }
 0x132   : > { %891 = vst [vmem:[#allocation3 + $0x3f] sm:$0x1] %v890_v50  ;;  %s2890_s28 = smov (!%p1470_p3, %s750_s28), 255  ;;  %p767_p4 = scmp.gt.s32.totalorder %s2584_s1, 0  ;;  %v987_v50 = vrot.slane %v986_v40, 1 }
 0x133   : > { %s2892_s3 = smov (!%p758_p13, %s757_s3), 0  ;;  %s753_s22 = scalar_lea.vmem [#allocation2], %s2890_s28 }
 0x134   : > { %v754_v52 = vld [vmem:[%s753_s22] sm:$0x1]  ;;  %s2894_s3 = smov (!%p1475_p0, %s2892_s3), 255  ;;  %p1480_p5 = scmp.lt.s32.totalorder %s2584_s1, 255  ;;  %v988_v59 = vadd.f32 %v987_v50, %v986_v40 }
 0x135   : > { %755 = vst [vmem:[#allocation3 + $0x30] sm:$0x1] %v754_v52  ;;  %s768_s7 = scalar_select %p767_p4, %s2584_s1, 0  ;;  %v982_v52 = vadd.f32 %v981_v43, %v980_v35 }
 0x136   : > { %s762_s30 = scalar_lea.vmem [#allocation2], %s2894_s3  ;;  %s775_s11 = sld [smem:[#allocation5 + %s774_s5]] }
 0x137   : > { %v763_v54 = vld [vmem:[%s762_s30] sm:$0x1]  ;;  %s2896_s7 = smov (!%p1480_p5, %s768_s7), 255  ;;  %s801_s4 = sadd.s32 6, %s2564_s26  ;;  %v1024_v57 = vsel %vm1023_vm1, %v982_v52, %v1022_v51 }
 0x138   : > { %764 = vst [vmem:[#allocation3 + $0x31] sm:$0x1] %v763_v54  ;;  %s784_s12 = sld [smem:[#allocation5 + %s783_s13]]  ;;  %s810_s14 = sadd.s32 7, %s2564_s26  ;;  %v998_v54 = vadd.f32 %v997_v45, %v996_v37  ;;  %v1026_v62 = vsel %vm1025_vm2, %v988_v59, %v1024_v57 }
 0x139   : > { %s771_s15 = scalar_lea.vmem [#allocation2], %s2896_s7  ;;  %s2596_s18 = sld [smem:[#allocation5 + %s792_s21]]  ;;  %v899_v15 = vld [vmem:[#allocation3 + $0x38] sm:$0xff]  ;;  %v1028_v3 = vsel %vm1027_vm3, %v994_v0, %v1026_v62 }
 0x13a   : > { %v772_v55 = vld [vmem:[%s771_s15] sm:$0x1]  ;;  %s2598_s24 = sld [smem:[#allocation5 + %s801_s4]]  ;;  %v964_v22 = vmul.f32 %v956_v14, %v899_v15  ;;  %v999_v61 = vrot.slane %v998_v54, 1 }
 0x13b   : > { %773 = vst [vmem:[#allocation3 + $0x32] sm:$0x1] %v772_v55  ;;  %s2600_s8 = sld [smem:[#allocation5 + %s810_s14]] }
 0x13c   : > { %p776_p7 = scmp.gt.s32.totalorder %s775_s11, 0  ;;  %p1485_p8 = scmp.lt.s32.totalorder %s775_s11, 255  ;;  %v1007_v30 = vrot.slane %v964_v22, 4  ;;  %v1000_v4 = vadd.f32 %v999_v61, %v998_v54 }
 0x13d   : > { %s2705_s0 = sld [smem:[#allocation20_spill]] }
 0x13e   : > { %s2898_s11 = smov (!%p776_p7, %s775_s11), 0  ;;  %p785_p6 = scmp.gt.s32.totalorder %s784_s12, 0  ;;  %v1008_v38 = vadd.f32 %v1007_v30, %v964_v22  ;;  %v1030_v7 = vsel %vm1029_vm4, %v1000_v4, %v1028_v3 }
 0x13f   : > { %p1490_p12 = scmp.lt.s32.totalorder %s784_s12, 255  ;;  %s2900_s11 = smov (!%p1485_p8, %s2898_s11), 255 }
 0x140   : > { %s2902_s12 = smov (!%p785_p6, %s784_s12), 0  ;;  %p794_p2 = scmp.gt.s32.totalorder %s2596_s18, 0  ;;  %v1009_v46 = vrot.slane %v1008_v38, 2 }
 0x141   : > { %s780_s26 = scalar_lea.vmem [#allocation2], %s2900_s11  ;;  %s2904_s12 = smov (!%p1490_p12, %s2902_s12), 255 }
 0x142   : > { %v781_v1 = vld [vmem:[%s780_s26] sm:$0x1]  ;;  %s795_s20 = scalar_select %p794_p2, %s2596_s18, 0  ;;  %v1010_v55 = vadd.f32 %v1009_v46, %v1008_v38 }
 0x143   : > { %782 = vst [vmem:[#allocation3 + $0x33] sm:$0x1] %v781_v1  ;;  %p1495_p9 = scmp.lt.s32.totalorder %s2596_s18, 255  ;;  %s789_s29 = scalar_lea.vmem [#allocation2], %s2904_s12 }
 0x144   : > { %v790_v5 = vld [vmem:[%s789_s29] sm:$0x1]  ;;  %p803_p1 = scmp.gt.s32.totalorder %s2598_s24, 0  ;;  %p1500_p3 = scmp.lt.s32.totalorder %s2598_s24, 255  ;;  %v1011_v63 = vrot.slane %v1010_v55, 1 }
 0x145   : > { %791 = vst [vmem:[#allocation3 + $0x34] sm:$0x1] %v790_v5  ;;  %s2906_s20 = smov (!%p1495_p9, %s795_s20), 255  ;;  %p812_p13 = scmp.gt.s32.totalorder %s2600_s8, 0 }
 0x146   : > { %s804_s23 = scalar_select %p803_p1, %s2598_s24, 0  ;;  %v1012_v5 = vadd.f32 %v1011_v63, %v1010_v55 }
 0x147   : > { %s798_s25 = scalar_lea.vmem [#allocation2], %s2906_s20  ;;  %p1505_p0 = scmp.lt.s32.totalorder %s2600_s8, 255 }
 0x148   : > { %v799_v16 = vld [vmem:[%s798_s25] sm:$0x1]  ;;  %s2908_s23 = smov (!%p1500_p3, %s804_s23), 255  ;;  %s2706_s6 = sld [smem:[#allocation25_spill]] }
 0x149   : > { %800 = vst [vmem:[#allocation3 + $0x35] sm:$0x1] %v799_v16  ;;  %s813_s19 = scalar_select %p812_p13, %s2600_s8, 0 }
 0x14a   : > { %s807_s16 = scalar_lea.vmem [#allocation2], %s2908_s23  ;;  %s1552_s27 = sshll.u32 %s2705_s0, 3 }
 0x14b   : > { %v808_v23 = vld [vmem:[%s807_s16] sm:$0x1]  ;;  %s2910_s19 = smov (!%p1505_p0, %s813_s19), 255  ;;  %s2707_s3 = sld [smem:[#allocation30_spill]] }
 0x14c   : > { %809 = vst [vmem:[#allocation3 + $0x36] sm:$0x1] %v808_v23  ;;  %s816_s9 = scalar_lea.vmem [#allocation2], %s2910_s19 }
 0x14d   : > { %v817_v31 = vld [vmem:[%s816_s9] sm:$0x1] }
 0x14e   : > { %818 = vst [vmem:[#allocation3 + $0x37] sm:$0x1] %v817_v31  ;;  %s2708_s1 = sshll.u32 %s2706_s6, 3  ;;  %s1038_s7 = scalar_lea.sflag [#allocation8], %s2706_s6 }
 0x14f   : > { %s211_s17 = scalar_lea.vmem [#allocation11], %s2708_s1 }
 0x150   : > { %s1050_s10 = sshll.u32 %s211_s17, 4  ;;  %s1051_s10 = int_to_ptr.vmem [resolvable:$true] %s1050_s10 }
 0x151   : > { %s1048_s13 = scalar_lea.hbm %s2707_s3, %s1552_s27  ;;  %s1934_s12 = scalar_lea.hbm %s2707_s3, 24 }
 0x152   : > { %s1052_s22 = sshll.u32 %s1048_s13, 4  ;;  %s1053_s22 = int_to_ptr.hbm [resolvable:$true] %s1052_s22 }
 0x153   : > { %s1928_s21 = sshra.s32 %s1053_s22, 4  ;;  %s1929_s21 = int_to_ptr.hbm [resolvable:$true] %s1928_s21 }
 0x154   : > { %s1930_s30 = scalar_lea.hbm %s1929_s21, 8  ;;  %p1935_p8 = scmp.lt.s32.totalorder %s1929_s21, %s2707_s3 }
 0x155   : > { %v898_v47 = vld [vmem:[#allocation3 + $0x30] sm:$0xff]  ;;  %p1931_p4 = scmp.ne.s32.totalorder %s1929_s21, %s1930_s30  ;;  %p1936_p6 = scmp.lt.s32.totalorder %s1934_s12, %s1930_s30 }
 0x156   : > { %v963_v49 = vmul.f32 %v949_v42, %v898_v47 }
 0x157   : > { %p1932_p5 = pnand %p1931_p4, %p2063_p10  ;;  %p1937_p12 = por %p1936_p6, %p1935_p8 }
 0x158   : > { %v1001_v53 = vrot.slane %v963_v49, 4 }
 0x159   : > { %p1933_p7 = pneg %p1932_p5 }
 0x15a   : > { %v1002_v58 = vadd.f32 %v1001_v53, %v963_v49 }
 0x15b   : > { %p1938_p2 = pnand %p1937_p12, %p1933_p7 }
 0x15c   : > { %v1003_v60 = vrot.slane %v1002_v58, 2 }
 0x15e   : > { %v1004_v1 = vadd.f32 %v1003_v60, %v1002_v58 }
 0x160   : > { %v1005_v2 = vrot.slane %v1004_v1, 1 }
 0x162   : > { %v1006_v6 = vadd.f32 %v1005_v2, %v1004_v1 }
 0x164   : > { %v1032_v8 = vsel %vm1031_vm5, %v1006_v6, %v1030_v7 }
 0x165   : > { %v1034_v9 = vsel %vm1033_vm6, %v1012_v5, %v1032_v8 }
 0x166   : > { %1036 = vst [vmem:[%s211_s17] sm:$0xff] %v1034_v9 }
 0x167   : > { %1941 = shalt.err (!%p1938_p2)
}
 0x168   : > { %1789 = dma.vmem_to_hbm [thread:$0]  (%p2063_p10), %s1051_s10, 128, %s1053_s22, %s1038_s7  }
 0x169 PF: > { %s2710_s18 = sld [smem:[#allocation19_spill]] }
 0x16a   : > { %s2711_s24 = sld [smem:[#allocation16_spill]] }
 0x16f   : > { %p1803_p9 = scmp.ge.s32.totalorder %s2710_s18, 2 }
 0x170   : > { %s1064_s26 = sand.u32 1, %s2711_s24  }
 0x171   : > { %p1799_p1 = pnand %p1803_p9, %p2067_p11  ;;  %s1065_s20 = scalar_lea.sflag [#allocation8], %s1064_s26 }
 0x173   : > { %p1800_p3 = pneg %p1799_p1 }
 0x175   : > { %1969 = dma.done.wait (%p1800_p3), %s1065_s20, 128  }
 0x176   : > { %1971 = vsyncadd (%p1800_p3), %s1065_s20, 4294967168  ;;  %s2713_s19 = sld [smem:[#allocation21_spill]] }
 0x177   : > { %s2714_s16 = sld [smem:[#allocation17_spill]] }
 0x178   : > { %s2715_s17 = sld [smem:[#allocation18_spill]] }
 0x179   : > { %s2716_s18 = sld [smem:[#allocation22_spill]] }
 0x17c   : > { %p27_p13 = scmp.ge.s32.totalorder %s2713_s19, 5  }
 0x17e   :  { %29 = sbr.rel (!%p27_p13) target bundleno = 15 (0xf), region = 150 }
 0x183   :  { %1071 = vsyncpa [#allocation7], 1 }
 0x184   :  { %1073 = vsyncpa [#allocation7 + $0x1], 1 }
 0x185   :  { %1074 = vsyncpa [#allocation10], 1 }
 0x186   :  { %1076 = vsyncpa [#allocation10 + $0x1], 1 }
 0x187   :  { %1077 = vsyncpa [#allocation8], 1 }
 0x188   :  { %1079 = vsyncpa [#allocation8 + $0x1], 1 }

</bundles_post_ra>
